<compile_context>
chip_gen: v7x
topology: tpu7x:2x2x1
jax: 0.10.0
libtpu: 0.0.40
codegen_flags: <defaults>
</compile_context>

<pallas_src>
import numpy as np
import jax
import jax.numpy as jnp
from jax import lax
from jax.experimental import pallas as pl
from jax.experimental.pallas import tpu as pltpu


def _pick_tile_h(H, W, target_px=2048):
    """Largest-enough row tile: TH divides H, TH*W a multiple of 32."""
    cand = [th for th in range(1, H + 1)
            if H % th == 0 and (th * W) % 32 == 0]
    if not cand:
        return H
    for th in cand:
        if th * W >= target_px:
            return th
    return cand[-1]


def _vmem_limit_bytes(TW, W, C_in, C_int, C_out):
    """Rough per-step working set (double-buffered I/O + scratch + temps)."""
    io = 2 * ((TW + W) * C_in * 2 + TW * C_out + 2 * TW * 2 * C_out * 2)
    scratch = (TW + W + 8) * C_int * 2
    temps = TW * (6 * C_int + 10 * C_out) * 4
    weights = (C_in * (C_int + C_out) + 12 * C_int * C_int
               + 4 * C_int * C_out) * 2
    est = io + scratch + temps + weights
    return int(min(max(2 * est, 16 << 20), 48 << 20))


def _make_kernel(H, W, TH, C_in, C_int, C_out):
    TW = TH * W
    NT = H // TH

    def kernel(x_ref, xh_ref, sel_ref,
               w_main_ref, bnm_b_ref, w_e1_ref, bn1_b_ref,
               w_tap_ref, bn2_b_ref, w_exp_ref, bn3_b_ref,
               out0_ref, out1_ref, ext_buf):
        t_idx = pl.program_id(1)

        x_tile = x_ref[0]                                      # (TW, C_in) bf16
        x_full = jnp.concatenate([x_tile, xh_ref[0]], axis=0)  # (TW+W, C_in)

        # ---- ext 1x1 projection (BN scale folded) + bias + ReLU, incl. halo row
        ext = jnp.dot(x_full, w_e1_ref[...], preferred_element_type=jnp.float32)
        ext = jnp.maximum(ext + bn1_b_ref[...], 0.0)

        # bf16 stash for the spatially shifted reads (tap matmuls consume bf16).
        ext_buf[0:TW + W, :] = ext.astype(jnp.bfloat16)
        ext_buf[TW + W:TW + W + 8, :] = jnp.zeros((8, C_int), jnp.bfloat16)

        # ---- boundary masks (no integer division on the row index) ----
        lin = lax.broadcasted_iota(jnp.int32, (TW, 1), 0)
        not_last_col = (lin % W) != (W - 1)
        last_tile = t_idx == (NT - 1)
        not_last_row = jnp.logical_not(
            jnp.logical_and(last_tile, lin >= (TW - W)))
        m_cr = jnp.logical_and(not_last_col, not_last_row)

        e00 = ext_buf[0:TW, :]
        e01 = jnp.where(not_last_col, ext_buf[1:TW + 1, :], 0.0
                        ).astype(jnp.bfloat16)
        e10 = jnp.where(not_last_row, ext_buf[W:TW + W, :], 0.0
                        ).astype(jnp.bfloat16)
        e11 = jnp.where(m_cr, ext_buf[W + 1:TW + W + 1, :], 0.0
                        ).astype(jnp.bfloat16)

        # ---- ConvTranspose(k=3,s=2,p=1,op=1): per-source accumulating dots,
        #      phase-major lanes [s=0 | s=1], split by output-row parity r ----
        # r = 0 (even output rows)
        t0 = jnp.dot(e00, w_tap_ref[0], preferred_element_type=jnp.float32)
        t0 += jnp.dot(e01, w_tap_ref[1], preferred_element_type=jnp.float32)
        t0 = jnp.maximum(t0 + bn2_b_ref[...], 0.0)
        t0 = jnp.dot(t0.astype(jnp.bfloat16), w_exp_ref[...],
                     preferred_element_type=jnp.float32)
        t0 = jnp.maximum(t0 + bn3_b_ref[...], 0.0)             # (TW, 2*C_out)

        # r = 1 (odd output rows)
        t1 = jnp.dot(e00, w_tap_ref[2], preferred_element_type=jnp.float32)
        t1 += jnp.dot(e01, w_tap_ref[3], preferred_element_type=jnp.float32)
        t1 += jnp.dot(e10, w_tap_ref[4], preferred_element_type=jnp.float32)
        t1 += jnp.dot(e11, w_tap_ref[5], preferred_element_type=jnp.float32)
        t1 = jnp.maximum(t1 + bn2_b_ref[...], 0.0)
        t1 = jnp.dot(t1.astype(jnp.bfloat16), w_exp_ref[...],
                     preferred_element_type=jnp.float32)
        t1 = jnp.maximum(t1 + bn3_b_ref[...], 0.0)

        # ---- main branch: 1x1 conv (BN folded) + MaxUnpool phase routing ----
        main = jnp.dot(x_tile, w_main_ref[...],
                       preferred_element_type=jnp.float32) + bnm_b_ref[...]
        sel = sel_ref[0].astype(jnp.int32)                     # (TW, C_out) in {0..3}
        main0 = jnp.concatenate([jnp.where(sel == 0, main, 0.0),
                                 jnp.where(sel == 1, main, 0.0)], axis=1)
        main1 = jnp.concatenate([jnp.where(sel == 2, main, 0.0),
                                 jnp.where(sel == 3, main, 0.0)], axis=1)

        out0_ref[0] = jnp.maximum(main0 + t0, 0.0).astype(out0_ref.dtype)
        out1_ref[0] = jnp.maximum(main1 + t1, 0.0).astype(out1_ref.dtype)

    return kernel


def upsampling_bottleneck(x_nhwc, idx_nhwc, params, tile_h=None):
    """x_nhwc: (N,H,W,C_in) f32; idx_nhwc: (N,H,W,C_out) flat (2H,2W) pool indices."""
    N, H, W, C_in = x_nhwc.shape
    C_out = params["w_main"].shape[1]
    C_int = params["w_e1"].shape[1]
    HW = H * W
    f32, bf16 = jnp.float32, jnp.bfloat16

    assert W % 8 == 0, "W must be a multiple of 8 (sublane tiling)"
    if tile_h is None:
        tile_h = _pick_tile_h(H, W)
    TH = tile_h
    assert H % TH == 0, "tile_h must divide H"
    NT = H // TH
    TW = TH * W
    assert TW % 32 == 0, "tile_h*W must be a multiple of 32 (int8 selector tile)"

    # Activations to bf16 (accumulation stays f32 inside the MXU).
    x_flat = x_nhwc.reshape(N, HW, C_in).astype(bf16)

    # MaxUnpool phase selector: 2-bit value (2*row_parity + col_parity of the
    # stored flat (2H, 2W) index), stored as int8.
    idx = idx_nhwc.reshape(N, HW, C_out).astype(jnp.int32)
    sel = (((idx // (2 * W)) % 2) * 2 + (idx % 2)).astype(jnp.int8)

    # ---- wrapper-time weight prep: fold BN scales, cast to bf16 ----
    w_main_s = (params["w_main"] * params["bnm_s"]).astype(bf16)   # (C_in, C_out)
    w_e1_s = (params["w_e1"] * params["bn1_s"]).astype(bf16)       # (C_in, C_int)

    # Transposed-conv taps, BN2 scale folded.  Tap index = kh*3+kw (PyTorch
    # ConvTranspose2d weights (C_in, C_out, kH, kW) need an explicit transpose
    # to this layout when porting real checkpoints).
    wt = params["w_t"] * params["bn2_s"]                    # (9, C_int, C_int)
    Z = jnp.zeros((C_int, C_int), f32)
    w_tap = jnp.stack([
        jnp.concatenate([wt[4], wt[5]], axis=1),   # r=0, source (i,   j  )
        jnp.concatenate([Z,     wt[3]], axis=1),   # r=0, source (i,   j+1)
        jnp.concatenate([wt[7], wt[8]], axis=1),   # r=1, source (i,   j  )
        jnp.concatenate([Z,     wt[6]], axis=1),   # r=1, source (i,   j+1)
        jnp.concatenate([wt[1], wt[2]], axis=1),   # r=1, source (i+1, j  )
        jnp.concatenate([Z,     wt[0]], axis=1),   # r=1, source (i+1, j+1)
    ], axis=0).astype(bf16)                                  # (6, C_int, 2*C_int)

    # 1x1 expansion for both column phases at once (block-diagonal).
    w_exp2 = jnp.kron(jnp.eye(2, dtype=f32),
                      params["w_e3"] * params["bn3_s"]).astype(bf16)  # (2C_int, 2C_out)

    bnm_b = params["bnm_b"].astype(f32)                      # (1, C_out)
    bn1_b = params["bn1_b"].astype(f32)                      # (1, C_int)
    bn2_b2 = jnp.tile(params["bn2_b"].astype(f32), (1, 2))   # (1, 2*C_int)
    bn3_b2 = jnp.tile(params["bn3_b"].astype(f32), (1, 2))   # (1, 2*C_out)

    def full(shape):
        nd = len(shape)
        return pl.BlockSpec(shape, lambda n, t, _nd=nd: (0,) * _nd)

    in_specs = [
        # x tile (TH rows) + 1-row halo (clamped for the last tile; its
        # contribution is masked in-kernel).
        pl.BlockSpec((1, TW, C_in), lambda n, t: (n, t, 0)),
        pl.BlockSpec((1, W, C_in),
                     lambda n, t: (n, jnp.minimum((t + 1) * TH, H - 1), 0)),
        pl.BlockSpec((1, TW, C_out), lambda n, t: (n, t, 0)),
        full((C_in, C_out)), full((1, C_out)),
        full((C_in, C_int)), full((1, C_int)),
        full((6, C_int, 2 * C_int)), full((1, 2 * C_int)),
        full((2 * C_int, 2 * C_out)), full((1, 2 * C_out)),
    ]
    out_spec = pl.BlockSpec((1, TW, 2 * C_out), lambda n, t: (n, t, 0))

    out0, out1 = pl.pallas_call(
        _make_kernel(H, W, TH, C_in, C_int, C_out),
        out_shape=(jax.ShapeDtypeStruct((N, HW, 2 * C_out), bf16),
                   jax.ShapeDtypeStruct((N, HW, 2 * C_out), bf16)),
        grid_spec=pltpu.PrefetchScalarGridSpec(
            num_scalar_prefetch=0,
            grid=(N, NT),
            in_specs=in_specs,
            out_specs=(out_spec, out_spec),
            scratch_shapes=[pltpu.VMEM((TW + W + 8, C_int), bf16)],
        ),
        compiler_params=pltpu.CompilerParams(
            dimension_semantics=("parallel", "parallel"),
            vmem_limit_bytes=_vmem_limit_bytes(TW, W, C_in, C_int, C_out)),
    )(x_flat, x_flat, sel, w_main_s, bnm_b, w_e1_s, bn1_b,
      w_tap, bn2_b2, w_exp2, bn3_b2)

    # out_r (N, HW, 2*C_out) with lanes [s*C_out + c] -> pure reshape to
    # (N, H, 2W, C_out); then one cheap row interleave (no 6-D transpose).
    r0 = out0.reshape(N, H, 2 * W, C_out)
    r1 = out1.reshape(N, H, 2 * W, C_out)
    out = jnp.stack([r0, r1], axis=2).reshape(N, 2 * H, 2 * W, C_out)
    return out


# ----------------------- pure NumPy reference (checking) ----------------------
def reference_np(x, idx, params, H, W):
    def relu(a):
        return np.maximum(a, 0.0)

    p = {k: np.asarray(v) for k, v in params.items()}
    N = x.shape[0]
    C_out = p["w_main"].shape[1]
    C_int = p["w_e1"].shape[1]

    main = np.einsum("nhwc,cd->nhwd", x, p["w_main"]) * p["bnm_s"] + p["bnm_b"]

    # MaxUnpool2d(kernel_size=2)
    up = np.zeros((N, 2 * H, 2 * W, C_out), np.float32)
    for n in range(N):
        for i in range(H):
            for j in range(W):
                for c in range(C_out):
                    t = int(idx[n, i, j, c])
                    up[n, t // (2 * W), t % (2 * W), c] = main[n, i, j, c]

    e1 = relu(np.einsum("nhwc,cd->nhwd", x, p["w_e1"]) * p["bn1_s"] + p["bn1_b"])

    w_t = p["w_t"].reshape(3, 3, C_int, C_int)
    tco = np.zeros((N, 2 * H, 2 * W, C_int), np.float32)
    for kh in range(3):
        for kw in range(3):
            for ih in range(H):
                for iw in range(W):
                    oh = 2 * ih - 1 + kh
                    ow = 2 * iw - 1 + kw
                    if 0 <= oh < 2 * H and 0 <= ow < 2 * W:
                        tco[:, oh, ow, :] += e1[:, ih, iw, :] @ w_t[kh, kw]
    tco = relu(tco * p["bn2_s"] + p["bn2_b"])
    e3 = relu(np.einsum("nhwc,cd->nhwd", tco, p["w_e3"]) * p["bn3_s"] + p["bn3_b"])
    return relu(up + e3)


if __name__ == "__main__":
    N, H, W = 2, 16, 16
    C_in, C_out = 16, 8
    intermediate = 4
    C_int = C_in // intermediate  # 4

    key = jax.random.PRNGKey(0)
    keys = jax.random.split(key, 12)

    x = jax.random.normal(keys[0], (N, H, W, C_in), jnp.float32)

    # Valid MaxPool2d(k=2,s=2) indices: within each 2x2 window, flattened (2H,2W).
    rh = jax.random.randint(keys[1], (N, H, W, C_out), 0, 2)
    rw = jax.random.randint(keys[2], (N, H, W, C_out), 0, 2)
    ii = jnp.arange(H).reshape(1, H, 1, 1)
    jj = jnp.arange(W).reshape(1, 1, W, 1)
    max_indices = ((2 * ii + rh) * (2 * W) + (2 * jj + rw)).astype(jnp.int32)

    def bn_fold(k, C):
        k1, k2, k3, k4 = jax.random.split(k, 4)
        gamma = jax.random.uniform(k1, (C,), jnp.float32, 0.5, 1.5)
        beta = 0.1 * jax.random.normal(k2, (C,), jnp.float32)
        mean = 0.1 * jax.random.normal(k3, (C,), jnp.float32)
        var = jax.random.uniform(k4, (C,), jnp.float32, 0.5, 1.5)
        scale = gamma / jnp.sqrt(var + 1e-5)
        bias = beta - mean * scale
        return scale.reshape(1, C), bias.reshape(1, C)

    params = {}
    params["w_main"] = 0.2 * jax.random.normal(keys[3], (C_in, C_out), jnp.float32)
    params["bnm_s"], params["bnm_b"] = bn_fold(keys[4], C_out)
    params["w_e1"] = 0.2 * jax.random.normal(keys[5], (C_in, C_int), jnp.float32)
    params["bn1_s"], params["bn1_b"] = bn_fold(keys[6], C_int)
    w_t = 0.2 * jax.random.normal(keys[7], (3, 3, C_int, C_int), jnp.float32)
    params["w_t"] = w_t.reshape(9, C_int, C_int)   # tap-major [kh*3+kw, ci, co]
    params["bn2_s"], params["bn2_b"] = bn_fold(keys[8], C_int)
    params["w_e3"] = 0.2 * jax.random.normal(keys[9], (C_int, C_out), jnp.float32)
    params["bn3_s"], params["bn3_b"] = bn_fold(keys[10], C_out)

    # tile_h=4 -> grid (N=2, 4 spatial tiles): exercises halo fetch across
    # tiles, last-tile clamping/masking, and the two-output row interleave.
    out = upsampling_bottleneck(x, max_indices, params, tile_h=4)
    out = jax.block_until_ready(out)

    ref = reference_np(np.asarray(x), np.asarray(max_indices), params, H, W)
    # bf16 matmul operands + bf16 output (f32 accumulation) => relaxed tolerance.
    np.testing.assert_allclose(np.asarray(out, dtype=np.float32), ref,
                               rtol=4e-2, atol=4e-2)
    print("KERNEL_OK")
</pallas_src>

<mosaic_0001>
module attributes {stable_mosaic.version = 11 : i64} {
  func.func @kernel(%arg0: i32, %arg1: i32, %arg2: memref<1x64x16xbf16, #tpu.memory_space<vmem>>, %arg3: memref<1x16x16xbf16, #tpu.memory_space<vmem>>, %arg4: memref<1x64x8xi8, #tpu.memory_space<vmem>>, %arg5: memref<16x8xbf16, #tpu.memory_space<vmem>>, %arg6: memref<1x8xf32, #tpu.memory_space<vmem>>, %arg7: memref<16x4xbf16, #tpu.memory_space<vmem>>, %arg8: memref<1x4xf32, #tpu.memory_space<vmem>>, %arg9: memref<6x4x8xbf16, #tpu.memory_space<vmem>>, %arg10: memref<1x8xf32, #tpu.memory_space<vmem>>, %arg11: memref<8x16xbf16, #tpu.memory_space<vmem>>, %arg12: memref<1x16xf32, #tpu.memory_space<vmem>>, %arg13: memref<1x64x16xbf16, #tpu.memory_space<vmem>>, %arg14: memref<1x64x16xbf16, #tpu.memory_space<vmem>>, %arg15: memref<88x4xbf16, #tpu.memory_space<vmem>>) attributes {dimension_semantics = [#tpu.dimension_semantics<parallel>, #tpu.dimension_semantics<parallel>], iteration_bounds = array<i64: 2, 4>, scalar_prefetch = 0 : i64, scratch_operands = 1 : i64, tpu.core_type = #tpu.core_type<tc>, window_params = [{transform_indices = @transform_0, window_bounds = array<i64: 1, 64, 16>}, {transform_indices = @transform_1, window_bounds = array<i64: 1, 16, 16>}, {transform_indices = @transform_2, window_bounds = array<i64: 1, 64, 8>}, {pipeline_mode = #tpu.pipeline_mode<synchronous>, transform_indices = @transform_3, window_bounds = array<i64: 16, 8>}, {pipeline_mode = #tpu.pipeline_mode<synchronous>, transform_indices = @transform_4, window_bounds = array<i64: 1, 8>}, {pipeline_mode = #tpu.pipeline_mode<synchronous>, transform_indices = @transform_5, window_bounds = array<i64: 16, 4>}, {pipeline_mode = #tpu.pipeline_mode<synchronous>, transform_indices = @transform_6, window_bounds = array<i64: 1, 4>}, {pipeline_mode = #tpu.pipeline_mode<synchronous>, transform_indices = @transform_7, window_bounds = array<i64: 6, 4, 8>}, {pipeline_mode = #tpu.pipeline_mode<synchronous>, transform_indices = @transform_8, window_bounds = array<i64: 1, 8>}, {pipeline_mode = #tpu.pipeline_mode<synchronous>, transform_indices = @transform_9, window_bounds = array<i64: 8, 16>}, {pipeline_mode = #tpu.pipeline_mode<synchronous>, transform_indices = @transform_10, window_bounds = array<i64: 1, 16>}, {transform_indices = @transform_11, window_bounds = array<i64: 1, 64, 16>}, {transform_indices = @transform_12, window_bounds = array<i64: 1, 64, 16>}]} {
    %c0 = arith.constant 0 : index
    %c0_0 = arith.constant 0 : index
    %c0_1 = arith.constant 0 : index
    %0 = vector.load %arg2[%c0, %c0_0, %c0_1] : memref<1x64x16xbf16, #tpu.memory_space<vmem>>, vector<1x64x16xbf16>
    %1 = vector.shape_cast %0 : vector<1x64x16xbf16> to vector<64x16xbf16>
    %c0_2 = arith.constant 0 : index
    %c0_3 = arith.constant 0 : index
    %c0_4 = arith.constant 0 : index
    %2 = vector.load %arg3[%c0_2, %c0_3, %c0_4] : memref<1x16x16xbf16, #tpu.memory_space<vmem>>, vector<1x16x16xbf16>
    %3 = vector.shape_cast %2 : vector<1x16x16xbf16> to vector<16x16xbf16>
    %4 = tpu.concatenate %1, %3 in 0 : vector<64x16xbf16>, vector<16x16xbf16> -> vector<80x16xbf16>
    %c0_5 = arith.constant 0 : index
    %c0_6 = arith.constant 0 : index
    %5 = vector.load %arg7[%c0_5, %c0_6] : memref<16x4xbf16, #tpu.memory_space<vmem>>, vector<16x4xbf16>
    %cst = arith.constant dense<0.000000e+00> : vector<80x4xf32>
    %6 = tpu.matmul %4, %5, %cst {dimension_numbers = #tpu.dot_dimension_numbers<[1], [0], [0], [1], [0, 0, 1, 1], [], []>} : vector<80x16xbf16>, vector<16x4xbf16>, vector<80x4xf32> -> vector<80x4xf32>
    %c0_7 = arith.constant 0 : index
    %c0_8 = arith.constant 0 : index
    %7 = vector.load %arg8[%c0_7, %c0_8] : memref<1x4xf32, #tpu.memory_space<vmem>>, vector<1x4xf32>
    %8 = vector.broadcast %7 : vector<1x4xf32> to vector<80x4xf32>
    %9 = arith.addf %6, %8 : vector<80x4xf32>
    %cst_9 = arith.constant 0.000000e+00 : f32
    %10 = vector.broadcast %cst_9 : f32 to vector<80x4xf32>
    %11 = arith.maximumf %9, %10 : vector<80x4xf32>
    %12 = arith.truncf %11 : vector<80x4xf32> to vector<80x4xbf16>
    %c0_10 = arith.constant 0 : index
    %c0_11 = arith.constant 0 : index
    %13 = vector.load %arg15[%c0_10, %c0_11] : memref<88x4xbf16, #tpu.memory_space<vmem>>, vector<80x4xbf16>
    tpu.vector_store %arg15[%c0_10, %c0_11], %12 {strides = array<i32>} : memref<88x4xbf16, #tpu.memory_space<vmem>>, vector<80x4xbf16>,
    %cst_12 = arith.constant 0.000000e+00 : bf16
    %14 = vector.broadcast %cst_12 : bf16 to vector<8x4xbf16>
    %c80 = arith.constant 80 : index
    %c0_13 = arith.constant 0 : index
    %15 = vector.load %arg15[%c80, %c0_13] : memref<88x4xbf16, #tpu.memory_space<vmem>>, vector<8x4xbf16>
    tpu.vector_store %arg15[%c80, %c0_13], %14 {strides = array<i32>} : memref<88x4xbf16, #tpu.memory_space<vmem>>, vector<8x4xbf16>,
    %16 = tpu.iota {dimensions = array<i32: 0>} : vector<64x1xi32>
    %c16_i32 = arith.constant 16 : i32
    %c0_i32 = arith.constant 0 : i32
    %17 = arith.cmpi eq, %c16_i32, %c0_i32 : i32
    %c1_i32 = arith.constant 1 : i32
    %18 = arith.select %17, %c1_i32, %c16_i32 : i32
    %19 = vector.broadcast %18 : i32 to vector<64x1xi32>
    %20 = arith.remsi %16, %19 : vector<64x1xi32>
    %c0_i32_14 = arith.constant 0 : i32
    %21 = vector.broadcast %c0_i32_14 : i32 to vector<64x1xi32>
    %22 = arith.cmpi ne, %20, %21 : vector<64x1xi32>
    %c0_i32_15 = arith.constant 0 : i32
    %23 = vector.broadcast %c0_i32_15 : i32 to vector<64x1xi32>
    %24 = arith.cmpi slt, %20, %23 : vector<64x1xi32>
    %c0_i32_16 = arith.constant 0 : i32
    %25 = arith.cmpi slt, %18, %c0_i32_16 : i32
    %26 = vector.broadcast %25 : i1 to vector<64x1xi1>
    %27 = vector.broadcast %26 : vector<64x1xi1> to vector<64x1xi1>
    %28 = arith.xori %24, %27 : vector<64x1xi1>
    %29 = arith.andi %28, %22 : vector<64x1xi1>
    %30 = vector.broadcast %18 : i32 to vector<64x1xi32>
    %31 = arith.addi %20, %30 : vector<64x1xi32>
    %32 = arith.select %29, %31, %20 : vector<64x1xi1>, vector<64x1xi32>
    %c15_i32 = arith.constant 15 : i32
    %33 = vector.broadcast %c15_i32 : i32 to vector<64x1xi32>
    %34 = arith.cmpi ne, %32, %33 : vector<64x1xi32>
    %c3_i32 = arith.constant 3 : i32
    %35 = arith.cmpi eq, %arg1, %c3_i32 : i32
    %c48_i32 = arith.constant 48 : i32
    %36 = vector.broadcast %c48_i32 : i32 to vector<64x1xi32>
    %37 = arith.cmpi sge, %16, %36 : vector<64x1xi32>
    %38 = vector.broadcast %35 : i1 to vector<64x1xi1>
    %39 = arith.andi %38, %37 : vector<64x1xi1>
    %cst_17 = arith.constant dense<true> : vector<64x1xi1>
    %40 = arith.xori %39, %cst_17 : vector<64x1xi1>
    %41 = arith.andi %34, %40 : vector<64x1xi1>
    %c0_18 = arith.constant 0 : index
    %c0_19 = arith.constant 0 : index
    %42 = vector.load %arg15[%c0_18, %c0_19] : memref<88x4xbf16, #tpu.memory_space<vmem>>, vector<64x4xbf16>
    %c1 = arith.constant 1 : index
    %c0_20 = arith.constant 0 : index
    %43 = vector.load %arg15[%c1, %c0_20] : memref<88x4xbf16, #tpu.memory_space<vmem>>, vector<64x4xbf16>
    %cst_21 = arith.constant 0.000000e+00 : f32
    %44 = arith.truncf %cst_21 : f32 to bf16
    %45 = vector.shape_cast %34 : vector<64x1xi1> to vector<64x1xi1>
    %46 = vector.broadcast %45 : vector<64x1xi1> to vector<64x4xi1>
    %47 = vector.broadcast %44 : bf16 to vector<64x4xbf16>
    %48 = arith.select %46, %43, %47 : vector<64x4xi1>, vector<64x4xbf16>
    %c16 = arith.constant 16 : index
    %c0_22 = arith.constant 0 : index
    %49 = vector.load %arg15[%c16, %c0_22] : memref<88x4xbf16, #tpu.memory_space<vmem>>, vector<64x4xbf16>
    %cst_23 = arith.constant 0.000000e+00 : f32
    %50 = arith.truncf %cst_23 : f32 to bf16
    %51 = vector.shape_cast %40 : vector<64x1xi1> to vector<64x1xi1>
    %52 = vector.broadcast %51 : vector<64x1xi1> to vector<64x4xi1>
    %53 = vector.broadcast %50 : bf16 to vector<64x4xbf16>
    %54 = arith.select %52, %49, %53 : vector<64x4xi1>, vector<64x4xbf16>
    %c17 = arith.constant 17 : index
    %c0_24 = arith.constant 0 : index
    %55 = vector.load %arg15[%c17, %c0_24] : memref<88x4xbf16, #tpu.memory_space<vmem>>, vector<64x4xbf16>
    %cst_25 = arith.constant 0.000000e+00 : f32
    %56 = arith.truncf %cst_25 : f32 to bf16
    %57 = vector.shape_cast %41 : vector<64x1xi1> to vector<64x1xi1>
    %58 = vector.broadcast %57 : vector<64x1xi1> to vector<64x4xi1>
    %59 = vector.broadcast %56 : bf16 to vector<64x4xbf16>
    %60 = arith.select %58, %55, %59 : vector<64x4xi1>, vector<64x4xbf16>
    %c0_26 = arith.constant 0 : index
    %c0_27 = arith.constant 0 : index
    %c0_28 = arith.constant 0 : index
    %61 = vector.load %arg9[%c0_26, %c0_27, %c0_28] : memref<6x4x8xbf16, #tpu.memory_space<vmem>>, vector<1x4x8xbf16>
    %62 = vector.shape_cast %61 : vector<1x4x8xbf16> to vector<4x8xbf16>
    %cst_29 = arith.constant dense<0.000000e+00> : vector<64x8xf32>
    %63 = tpu.matmul %42, %62, %cst_29 {dimension_numbers = #tpu.dot_dimension_numbers<[1], [0], [0], [1], [0, 0, 1, 1], [], []>} : vector<64x4xbf16>, vector<4x8xbf16>, vector<64x8xf32> -> vector<64x8xf32>
    %c1_30 = arith.constant 1 : index
    %c0_31 = arith.constant 0 : index
    %c0_32 = arith.constant 0 : index
    %64 = vector.load %arg9[%c1_30, %c0_31, %c0_32] : memref<6x4x8xbf16, #tpu.memory_space<vmem>>, vector<1x4x8xbf16>
    %65 = vector.shape_cast %64 : vector<1x4x8xbf16> to vector<4x8xbf16>
    %cst_33 = arith.constant dense<0.000000e+00> : vector<64x8xf32>
    %66 = tpu.matmul %48, %65, %cst_33 {dimension_numbers = #tpu.dot_dimension_numbers<[1], [0], [0], [1], [0, 0, 1, 1], [], []>} : vector<64x4xbf16>, vector<4x8xbf16>, vector<64x8xf32> -> vector<64x8xf32>
    %67 = arith.addf %63, %66 : vector<64x8xf32>
    %c0_34 = arith.constant 0 : index
    %c0_35 = arith.constant 0 : index
    %68 = vector.load %arg10[%c0_34, %c0_35] : memref<1x8xf32, #tpu.memory_space<vmem>>, vector<1x8xf32>
    %69 = vector.broadcast %68 : vector<1x8xf32> to vector<64x8xf32>
    %70 = arith.addf %67, %69 : vector<64x8xf32>
    %cst_36 = arith.constant 0.000000e+00 : f32
    %71 = vector.broadcast %cst_36 : f32 to vector<64x8xf32>
    %72 = arith.maximumf %70, %71 : vector<64x8xf32>
    %73 = arith.truncf %72 : vector<64x8xf32> to vector<64x8xbf16>
    %c0_37 = arith.constant 0 : index
    %c0_38 = arith.constant 0 : index
    %74 = vector.load %arg11[%c0_37, %c0_38] : memref<8x16xbf16, #tpu.memory_space<vmem>>, vector<8x16xbf16>
    %cst_39 = arith.constant dense<0.000000e+00> : vector<64x16xf32>
    %75 = tpu.matmul %73, %74, %cst_39 {dimension_numbers = #tpu.dot_dimension_numbers<[1], [0], [0], [1], [0, 0, 1, 1], [], []>} : vector<64x8xbf16>, vector<8x16xbf16>, vector<64x16xf32> -> vector<64x16xf32>
    %c0_40 = arith.constant 0 : index
    %c0_41 = arith.constant 0 : index
    %76 = vector.load %arg12[%c0_40, %c0_41] : memref<1x16xf32, #tpu.memory_space<vmem>>, vector<1x16xf32>
    %77 = vector.broadcast %76 : vector<1x16xf32> to vector<64x16xf32>
    %78 = arith.addf %75, %77 : vector<64x16xf32>
    %cst_42 = arith.constant 0.000000e+00 : f32
    %79 = vector.broadcast %cst_42 : f32 to vector<64x16xf32>
    %80 = arith.maximumf %78, %79 : vector<64x16xf32>
    %c2 = arith.constant 2 : index
    %c0_43 = arith.constant 0 : index
    %c0_44 = arith.constant 0 : index
    %81 = vector.load %arg9[%c2, %c0_43, %c0_44] : memref<6x4x8xbf16, #tpu.memory_space<vmem>>, vector<1x4x8xbf16>
    %82 = vector.shape_cast %81 : vector<1x4x8xbf16> to vector<4x8xbf16>
    %cst_45 = arith.constant dense<0.000000e+00> : vector<64x8xf32>
    %83 = tpu.matmul %42, %82, %cst_45 {dimension_numbers = #tpu.dot_dimension_numbers<[1], [0], [0], [1], [0, 0, 1, 1], [], []>} : vector<64x4xbf16>, vector<4x8xbf16>, vector<64x8xf32> -> vector<64x8xf32>
    %c3 = arith.constant 3 : index
    %c0_46 = arith.constant 0 : index
    %c0_47 = arith.constant 0 : index
    %84 = vector.load %arg9[%c3, %c0_46, %c0_47] : memref<6x4x8xbf16, #tpu.memory_space<vmem>>, vector<1x4x8xbf16>
    %85 = vector.shape_cast %84 : vector<1x4x8xbf16> to vector<4x8xbf16>
    %cst_48 = arith.constant dense<0.000000e+00> : vector<64x8xf32>
    %86 = tpu.matmul %48, %85, %cst_48 {dimension_numbers = #tpu.dot_dimension_numbers<[1], [0], [0], [1], [0, 0, 1, 1], [], []>} : vector<64x4xbf16>, vector<4x8xbf16>, vector<64x8xf32> -> vector<64x8xf32>
    %87 = arith.addf %83, %86 : vector<64x8xf32>
    %c4 = arith.constant 4 : index
    %c0_49 = arith.constant 0 : index
    %c0_50 = arith.constant 0 : index
    %88 = vector.load %arg9[%c4, %c0_49, %c0_50] : memref<6x4x8xbf16, #tpu.memory_space<vmem>>, vector<1x4x8xbf16>
    %89 = vector.shape_cast %88 : vector<1x4x8xbf16> to vector<4x8xbf16>
    %cst_51 = arith.constant dense<0.000000e+00> : vector<64x8xf32>
    %90 = tpu.matmul %54, %89, %cst_51 {dimension_numbers = #tpu.dot_dimension_numbers<[1], [0], [0], [1], [0, 0, 1, 1], [], []>} : vector<64x4xbf16>, vector<4x8xbf16>, vector<64x8xf32> -> vector<64x8xf32>
    %91 = arith.addf %87, %90 : vector<64x8xf32>
    %c5 = arith.constant 5 : index
    %c0_52 = arith.constant 0 : index
    %c0_53 = arith.constant 0 : index
    %92 = vector.load %arg9[%c5, %c0_52, %c0_53] : memref<6x4x8xbf16, #tpu.memory_space<vmem>>, vector<1x4x8xbf16>
    %93 = vector.shape_cast %92 : vector<1x4x8xbf16> to vector<4x8xbf16>
    %cst_54 = arith.constant dense<0.000000e+00> : vector<64x8xf32>
    %94 = tpu.matmul %60, %93, %cst_54 {dimension_numbers = #tpu.dot_dimension_numbers<[1], [0], [0], [1], [0, 0, 1, 1], [], []>} : vector<64x4xbf16>, vector<4x8xbf16>, vector<64x8xf32> -> vector<64x8xf32>
    %95 = arith.addf %91, %94 : vector<64x8xf32>
    %c0_55 = arith.constant 0 : index
    %c0_56 = arith.constant 0 : index
    %96 = vector.load %arg10[%c0_55, %c0_56] : memref<1x8xf32, #tpu.memory_space<vmem>>, vector<1x8xf32>
    %97 = vector.broadcast %96 : vector<1x8xf32> to vector<64x8xf32>
    %98 = arith.addf %95, %97 : vector<64x8xf32>
    %cst_57 = arith.constant 0.000000e+00 : f32
    %99 = vector.broadcast %cst_57 : f32 to vector<64x8xf32>
    %100 = arith.maximumf %98, %99 : vector<64x8xf32>
    %101 = arith.truncf %100 : vector<64x8xf32> to vector<64x8xbf16>
    %c0_58 = arith.constant 0 : index
    %c0_59 = arith.constant 0 : index
    %102 = vector.load %arg11[%c0_58, %c0_59] : memref<8x16xbf16, #tpu.memory_space<vmem>>, vector<8x16xbf16>
    %cst_60 = arith.constant dense<0.000000e+00> : vector<64x16xf32>
    %103 = tpu.matmul %101, %102, %cst_60 {dimension_numbers = #tpu.dot_dimension_numbers<[1], [0], [0], [1], [0, 0, 1, 1], [], []>} : vector<64x8xbf16>, vector<8x16xbf16>, vector<64x16xf32> -> vector<64x16xf32>
    %c0_61 = arith.constant 0 : index
    %c0_62 = arith.constant 0 : index
    %104 = vector.load %arg12[%c0_61, %c0_62] : memref<1x16xf32, #tpu.memory_space<vmem>>, vector<1x16xf32>
    %105 = vector.broadcast %104 : vector<1x16xf32> to vector<64x16xf32>
    %106 = arith.addf %103, %105 : vector<64x16xf32>
    %cst_63 = arith.constant 0.000000e+00 : f32
    %107 = vector.broadcast %cst_63 : f32 to vector<64x16xf32>
    %108 = arith.maximumf %106, %107 : vector<64x16xf32>
    %c0_64 = arith.constant 0 : index
    %c0_65 = arith.constant 0 : index
    %109 = vector.load %arg5[%c0_64, %c0_65] : memref<16x8xbf16, #tpu.memory_space<vmem>>, vector<16x8xbf16>
    %cst_66 = arith.constant dense<0.000000e+00> : vector<64x8xf32>
    %110 = tpu.matmul %1, %109, %cst_66 {dimension_numbers = #tpu.dot_dimension_numbers<[1], [0], [0], [1], [0, 0, 1, 1], [], []>} : vector<64x16xbf16>, vector<16x8xbf16>, vector<64x8xf32> -> vector<64x8xf32>
    %c0_67 = arith.constant 0 : index
    %c0_68 = arith.constant 0 : index
    %111 = vector.load %arg6[%c0_67, %c0_68] : memref<1x8xf32, #tpu.memory_space<vmem>>, vector<1x8xf32>
    %112 = vector.broadcast %111 : vector<1x8xf32> to vector<64x8xf32>
    %113 = arith.addf %110, %112 : vector<64x8xf32>
    %c0_69 = arith.constant 0 : index
    %c0_70 = arith.constant 0 : index
    %c0_71 = arith.constant 0 : index
    %114 = vector.load %arg4[%c0_69, %c0_70, %c0_71] : memref<1x64x8xi8, #tpu.memory_space<vmem>>, vector<1x64x8xi8>
    %115 = vector.shape_cast %114 : vector<1x64x8xi8> to vector<64x8xi8>
    %116 = arith.extsi %115 : vector<64x8xi8> to vector<64x8xi32>
    %c0_i32_72 = arith.constant 0 : i32
    %117 = vector.broadcast %c0_i32_72 : i32 to vector<64x8xi32>
    %118 = arith.cmpi eq, %116, %117 : vector<64x8xi32>
    %cst_73 = arith.constant 0.000000e+00 : f32
    %119 = vector.broadcast %cst_73 : f32 to vector<64x8xf32>
    %120 = arith.select %118, %113, %119 : vector<64x8xi1>, vector<64x8xf32>
    %c1_i32_74 = arith.constant 1 : i32
    %121 = vector.broadcast %c1_i32_74 : i32 to vector<64x8xi32>
    %122 = arith.cmpi eq, %116, %121 : vector<64x8xi32>
    %cst_75 = arith.constant 0.000000e+00 : f32
    %123 = vector.broadcast %cst_75 : f32 to vector<64x8xf32>
    %124 = arith.select %122, %113, %123 : vector<64x8xi1>, vector<64x8xf32>
    %125 = tpu.concatenate %120, %124 in 1 : vector<64x8xf32>, vector<64x8xf32> -> vector<64x16xf32>
    %c2_i32 = arith.constant 2 : i32
    %126 = vector.broadcast %c2_i32 : i32 to vector<64x8xi32>
    %127 = arith.cmpi eq, %116, %126 : vector<64x8xi32>
    %cst_76 = arith.constant 0.000000e+00 : f32
    %128 = vector.broadcast %cst_76 : f32 to vector<64x8xf32>
    %129 = arith.select %127, %113, %128 : vector<64x8xi1>, vector<64x8xf32>
    %c3_i32_77 = arith.constant 3 : i32
    %130 = vector.broadcast %c3_i32_77 : i32 to vector<64x8xi32>
    %131 = arith.cmpi eq, %116, %130 : vector<64x8xi32>
    %cst_78 = arith.constant 0.000000e+00 : f32
    %132 = vector.broadcast %cst_78 : f32 to vector<64x8xf32>
    %133 = arith.select %131, %113, %132 : vector<64x8xi1>, vector<64x8xf32>
    %134 = tpu.concatenate %129, %133 in 1 : vector<64x8xf32>, vector<64x8xf32> -> vector<64x16xf32>
    %135 = arith.addf %125, %80 : vector<64x16xf32>
    %cst_79 = arith.constant 0.000000e+00 : f32
    %136 = vector.broadcast %cst_79 : f32 to vector<64x16xf32>
    %137 = arith.maximumf %135, %136 : vector<64x16xf32>
    %138 = arith.truncf %137 : vector<64x16xf32> to vector<64x16xbf16>
    %c0_80 = arith.constant 0 : index
    %c0_81 = arith.constant 0 : index
    %c0_82 = arith.constant 0 : index
    %139 = vector.load %arg13[%c0_80, %c0_81, %c0_82] : memref<1x64x16xbf16, #tpu.memory_space<vmem>>, vector<1x64x16xbf16>
    %140 = vector.shape_cast %139 : vector<1x64x16xbf16> to vector<64x16xbf16>
    %141 = vector.shape_cast %138 : vector<64x16xbf16> to vector<1x64x16xbf16>
    tpu.vector_store %arg13[%c0_80, %c0_81, %c0_82], %141 {strides = array<i32>} : memref<1x64x16xbf16, #tpu.memory_space<vmem>>, vector<1x64x16xbf16>,
    %142 = arith.addf %134, %108 : vector<64x16xf32>
    %cst_83 = arith.constant 0.000000e+00 : f32
    %143 = vector.broadcast %cst_83 : f32 to vector<64x16xf32>
    %144 = arith.maximumf %142, %143 : vector<64x16xf32>
    %145 = arith.truncf %144 : vector<64x16xf32> to vector<64x16xbf16>
    %c0_84 = arith.constant 0 : index
    %c0_85 = arith.constant 0 : index
    %c0_86 = arith.constant 0 : index
    %146 = vector.load %arg14[%c0_84, %c0_85, %c0_86] : memref<1x64x16xbf16, #tpu.memory_space<vmem>>, vector<1x64x16xbf16>
    %147 = vector.shape_cast %146 : vector<1x64x16xbf16> to vector<64x16xbf16>
    %148 = vector.shape_cast %145 : vector<64x16xbf16> to vector<1x64x16xbf16>
    tpu.vector_store %arg14[%c0_84, %c0_85, %c0_86], %148 {strides = array<i32>} : memref<1x64x16xbf16, #tpu.memory_space<vmem>>, vector<1x64x16xbf16>,
    return
  }
  func.func @transform_0(%arg0: i32, %arg1: i32) -> (i32, i32, i32) {
    %c0_i32 = arith.constant 0 : i32
    %c0_i32_0 = arith.constant 0 : i32
    return %arg0, %arg1, %c0_i32 : i32, i32, i32
  }
  func.func @transform_1(%arg0: i32, %arg1: i32) -> (i32, i32, i32) {
    %c1_i32 = arith.constant 1 : i32
    %0 = arith.addi %arg1, %c1_i32 : i32
    %c4_i32 = arith.constant 4 : i32
    %1 = arith.muli %0, %c4_i32 : i32
    %c15_i32 = arith.constant 15 : i32
    %2 = arith.minsi %1, %c15_i32 : i32
    %c0_i32 = arith.constant 0 : i32
    %c0_i32_0 = arith.constant 0 : i32
    return %arg0, %2, %c0_i32 : i32, i32, i32
  }
  func.func @transform_2(%arg0: i32, %arg1: i32) -> (i32, i32, i32) {
    %c0_i32 = arith.constant 0 : i32
    %c0_i32_0 = arith.constant 0 : i32
    return %arg0, %arg1, %c0_i32 : i32, i32, i32
  }
  func.func @transform_3(%arg0: i32, %arg1: i32) -> (i32, i32) {
    %c0_i32 = arith.constant 0 : i32
    %c0_i32_0 = arith.constant 0 : i32
    %c0_i32_1 = arith.constant 0 : i32
    return %c0_i32, %c0_i32_0 : i32, i32
  }
  func.func @transform_4(%arg0: i32, %arg1: i32) -> (i32, i32) {
    %c0_i32 = arith.constant 0 : i32
    %c0_i32_0 = arith.constant 0 : i32
    %c0_i32_1 = arith.constant 0 : i32
    return %c0_i32, %c0_i32_0 : i32, i32
  }
  func.func @transform_5(%arg0: i32, %arg1: i32) -> (i32, i32) {
    %c0_i32 = arith.constant 0 : i32
    %c0_i32_0 = arith.constant 0 : i32
    %c0_i32_1 = arith.constant 0 : i32
    return %c0_i32, %c0_i32_0 : i32, i32
  }
  func.func @transform_6(%arg0: i32, %arg1: i32) -> (i32, i32) {
    %c0_i32 = arith.constant 0 : i32
    %c0_i32_0 = arith.constant 0 : i32
    %c0_i32_1 = arith.constant 0 : i32
    return %c0_i32, %c0_i32_0 : i32, i32
  }
  func.func @transform_7(%arg0: i32, %arg1: i32) -> (i32, i32, i32) {
    %c0_i32 = arith.constant 0 : i32
    %c0_i32_0 = arith.constant 0 : i32
    %c0_i32_1 = arith.constant 0 : i32
    %c0_i32_2 = arith.constant 0 : i32
    return %c0_i32, %c0_i32_0, %c0_i32_1 : i32, i32, i32
  }
  func.func @transform_8(%arg0: i32, %arg1: i32) -> (i32, i32) {
    %c0_i32 = arith.constant 0 : i32
    %c0_i32_0 = arith.constant 0 : i32
    %c0_i32_1 = arith.constant 0 : i32
    return %c0_i32, %c0_i32_0 : i32, i32
  }
  func.func @transform_9(%arg0: i32, %arg1: i32) -> (i32, i32) {
    %c0_i32 = arith.constant 0 : i32
    %c0_i32_0 = arith.constant 0 : i32
    %c0_i32_1 = arith.constant 0 : i32
    return %c0_i32, %c0_i32_0 : i32, i32
  }
  func.func @transform_10(%arg0: i32, %arg1: i32) -> (i32, i32) {
    %c0_i32 = arith.constant 0 : i32
    %c0_i32_0 = arith.constant 0 : i32
    %c0_i32_1 = arith.constant 0 : i32
    return %c0_i32, %c0_i32_0 : i32, i32
  }
  func.func @transform_11(%arg0: i32, %arg1: i32) -> (i32, i32, i32) {
    %c0_i32 = arith.constant 0 : i32
    %c0_i32_0 = arith.constant 0 : i32
    return %arg0, %arg1, %c0_i32 : i32, i32, i32
  }
  func.func @transform_12(%arg0: i32, %arg1: i32) -> (i32, i32, i32) {
    %c0_i32 = arith.constant 0 : i32
    %c0_i32_0 = arith.constant 0 : i32
    return %arg0, %arg1, %c0_i32 : i32, i32, i32
  }
}

</mosaic_0001>

<bundles_post_ra>
// kernel: tpu_custom_call.1
= control target key start
LH: loop header
LB: loop body
LE: loop exit
PB: predicated region body
PF: predicated region fallthrough
CT: control target
= control target key end

     0   :  { %s3168_s21 = smov 0   ;;  %s3170_s22 = smov 0   ;;  %s3861_s0 = inlined_call_operand.vmem [shape: bf16[2,256,16], index: 0, kind: input, shape index: {}]   ;;  %s3862_s1 = inlined_call_operand.vmem [shape: bf16[2,256,16], index: 1, kind: input, shape index: {}]   ;;  %s3863_s2 = inlined_call_operand.vmem [shape: s8[2,256,8], index: 2, kind: input, shape index: {}]   ;;  %s3864_s3 = inlined_call_operand.vmem [shape: bf16[16,8], index: 3, kind: input, shape index: {}]   ;;  %s3865_s4 = inlined_call_operand.vmem [shape: f32[1,8], index: 4, kind: input, shape index: {}]   ;;  %s3866_s5 = inlined_call_operand.vmem [shape: bf16[16,4], index: 5, kind: input, shape index: {}]   ;;  %s3867_s6 = inlined_call_operand.vmem [shape: f32[1,4], index: 6, kind: input, shape index: {}]   ;;  %s3868_s7 = inlined_call_operand.vmem [shape: bf16[6,4,8], index: 7, kind: input, shape index: {}]   ;;  %s3869_s8 = inlined_call_operand.vmem [shape: f32[1,8], index: 8, kind: input, shape index: {}]   ;;  %s3870_s9 = inlined_call_operand.vmem [shape: bf16[8,16], index: 9, kind: input, shape index: {}]   ;;  %s3871_s10 = inlined_call_operand.vmem [shape: f32[1,16], index: 10, kind: input, shape index: {}]   ;;  %s3872_s11 = inlined_call_operand.vmem [shape: bf16[2,256,16], index: 11, kind: output, shape index: {0}]   ;;  %s3873_s12 = inlined_call_operand.vmem [shape: bf16[2,256,16], index: 12, kind: output, shape index: {1}]  }
   0x1   :  { %s3172_s23 = smov 0   ;;  %s3174_s24 = smov 0  }
   0x2   :  { %s3176_s25 = smov 0  }
   0x3 LB: > { %s32_s26 = sadd.s32 1, %s3088_s23  ;;  %s35_s27 = sadd.s32 1, %s3092_s24  ;;  %s3096_s25 = sphi %s3176_s25, %s23_s25   ;;  %s3092_s24 = sphi %s3174_s24, %s3897_s24   ;;  %s3088_s23 = sphi %s3172_s23, %s3896_s23   ;;  %s3084_s22 = sphi %s3170_s22, %s3895_s22   ;;  %s3080_s21 = sphi %s3168_s21, %s3894_s21  }
   0x4   : > { %p33_p0 = scmp.ge.s32.totalorder %s32_s26, 4  ;;  %p2628_p1 = scmp.ge.s32.totalorder %s3096_s25, 1 }
   0x5   : > { %p438_p2 = scmp.lt.s32.totalorder %s3096_s25, 9 }
   0x6   : > { %s3899_s26 = smov (%p33_p0, %s32_s26), 0  ;;  %s3901_s27 = smov (!%p33_p0, %s35_s27), %s3092_s24 }
   0x7   : > { %p439_p3 = pnand %p2628_p1, %p438_p2  ;;  %p37_p4 = scmp.ge.s32.totalorder %s3901_s27, 2 }
   0x8   : > { %v3049_v0 = vld [vmem:[%s3866_s5] sm:$0xff] (!%p439_p3)   ;;  %v3098_v1 = vmov (!%p439_p3), 0.0   ;;  %s2629_s30 = sshll.u32 (!%p439_p3), %s3080_s21, 3  ;;  %p520_p5 = scmp.lt.s32.totalorder (!%p439_p3), %s3084_s22, 1  ;;  %vm3099_vm0 = vmmov (!%p439_p3), 0   ;;  %vm630_vm1 = vcmask (!%p439_p3), 130048   ;;  %v781_v14 = vlaneseq (!%p439_p3) }
   0x9   : > { %s3903_s27 = smov (%p37_p4, %s3901_s27), 0  ;;  %442 = sbr.rel (%p439_p3) target bundleno = 928 (0x3a0), region = 64 }
   0xa   : > { %2847 = vmatprep.subr.bf16.mxu0 (!%p439_p3), %v3098_v1  ;;  %2959 = vmatprep.subr.bf16.mxu1 (!%p439_p3), %v3098_v1  ;;  %p522_p6 = scmp.lt.s32.totalorder (!%p439_p3), %s2629_s30, 31  ;;  %s2752_s13 = sshll.u32 (!%p439_p3), %s3080_s21, 2  ;;  %vm769_vm2 = vcmask (!%p439_p3), 27648   ;;  %v3100_v7 = vmov (!%p439_p3), 0   ;;  %vm1295_vm3 = vcmask (!%p439_p3), 1041408   ;;  %v782_v15 = vshrl.u32 (!%p439_p3), %v781_v14, 7 }
   0xb   : > { %2848 = vmatpush3.bf16.msra.mxu0 (!%p439_p3), %v3049_v0  ;;  %2849 = vmatprep.mubr.msk.bf16.mxu0 (!%p439_p3), %vm3099_vm0, %v3098_v1  ;;  %s2753_s15 = sadd.s32 (!%p439_p3), 4, %s2752_s13  ;;  %780 = vst.msk [vmem:[#allocation2 + $0x28] sm:$0xf] (!%p439_p3), %vm769_vm2, %v3100_v7  ;;  %v2692_v8 = vld [vmem:[%s3868_s7 + $0x6] sm:$0x3] (!%p439_p3)  ;;  %p894_p9 = scmp.eq.s32.totalorder (!%p439_p3), %s3080_s21, 3 }
   0xc   : > { %2960 = vmatpush3.bf16.msra.mxu1 (!%p439_p3), %v3049_v0  ;;  %2865 = vmatprep.mubr.msk.bf16.mxu1 (!%p439_p3), %vm3099_vm0, %v3098_v1  ;;  %p531_p7 = scmp.lt.s32.totalorder (!%p439_p3), %s2753_s15, 15  ;;  %v1594_v9 = vsel (!%p439_p3), %vm1295_vm3, %v2692_v8, 0  ;;  %v2667_v10 = vld [vmem:[%s3868_s7 + $0x2] sm:$0x3] (!%p439_p3)  ;;  %v3254_v12 = vld [vmem:[%s3868_s7 + $0x4] sm:$0x3] (!%p439_p3) }
   0xd   : > { %2996 = vmatprep.subr.msk.bf16.mxu0 (!%p439_p3), %vm1295_vm3, %v2692_v8  ;;  %2993 = vmatprep.subr.msk.bf16.mxu1 (!%p439_p3), %vm1295_vm3, %v2667_v10  ;;  %v1297_v11 = vsel (!%p439_p3), %vm1295_vm3, %v2667_v10, 0  ;;  %v3261_v13 = vld [vmem:[%s3868_s7] sm:$0x3] (!%p439_p3)  ;;  %v783_v16 = vadd.s32 (!%p439_p3), 8, %v782_v15  ;;  %v785_v17 = vadd.s32 (!%p439_p3), 24, %v782_v15  ;;  %v789_v20 = vadd.s32 (!%p439_p3), 56, %v782_v15 }
   0xe   : > { %vm3101_vm5 = vmmov (!%p439_p3), 1   ;;  %v787_v26 = vadd.s32 (!%p439_p3), 40, %v782_v15  ;;  %v3279_v27 = vld [vmem:[%s3867_s6] ss:$0 sm:$0xff] (!%p439_p3)  ;;  %v1662_v56 = vsel (!%p439_p3), %vm1295_vm3, %v3254_v12, 0 }
   0xf   : > { %v801_v18 = vand.u32 (!%p439_p3), 15, %v783_v16  ;;  %v815_v19 = vand.u32 (!%p439_p3), 15, %v785_v17  ;;  %vm3268_vm6 = vmpackc.low (!%p439_p3), %vm3101_vm5, %vm3101_vm5  ;;  %v843_v23 = vand.u32 (!%p439_p3), 15, %v789_v20 }
  0x10   : > { %s3905_s22 = smov (!%p520_p5, %s3084_s22), 1  ;;  %s3907_s30 = smov (!%p522_p6, %s2629_s30), 31  ;;  %v963_v24 = vsel %vm3268_vm6, 65537, %v3100_v7  ;;  %v829_v33 = vand.u32 15, %v787_v26 }
  0x11   : > { %s2630_s14 = sshll.u32 %s3905_s22, 5  ;;  %s3909_s15 = smov (!%p531_p7, %s2753_s15), 15  ;;  %vm887_vm4 = vcmp.ne.s32.totalorder %v801_v18, 15  ;;  %vm889_vm8 = vcmp.ne.s32.totalorder %v815_v19, 15  ;;  %v975_v28 = vshrl.u32 %v963_v24, 16  ;;  %vm3281_vm11 = vcmp.ne.s32.totalorder %v843_v23, 15 }
  0x12   : > { %s3207_s16 = sadd.s32 %s2630_s14, %s3907_s30  ;;  %s2633_s22 = sshll.u32 %s3909_s15, 1  ;;  %vm956_vm7 = vmpackc.low %vm887_vm4, %vm887_vm4  ;;  %vm3304_vm15 = vcmp.ne.s32.totalorder %v829_v33, 15  ;;  %vm972_vm4 = vsmask.f32 4368  ;;  %v978_v47 = vshll.u32 %v963_v24, 16 }
  0x13   : > { %s3210_s17 = sshll.u32 %s3207_s16, 2  ;;  %p536_p8 = scmp.lt.s32.totalorder %s2633_s22, 31  ;;  %v964_v25 = vsel %vm956_vm7, 65537, %v3100_v7  ;;  %vm958_vm10 = vmpackc.low %vm889_vm8, %vm889_vm8  ;;  %v977_v38 = vrot.slane %v975_v28, 7 }
  0x14   : > { %s527_s20 = scalar_lea.vmem %s3861_s0, %s3210_s17  ;;  %v983_v29 = vshrl.u32 %v964_v25, 16  ;;  %v966_v32 = vsel %vm958_vm10, 65537, %v3100_v7  ;;  %v986_v40 = vshll.u32 %v964_v25, 16  ;;  %vm960_vm7 = vmpackc.low %vm3304_vm15, %vm3304_vm15  ;;  %s3758_s21 = scalar_lea.vmem %s3873_s12, %s3210_s17 }
  0x15   : > { %v3216_v2 = vld [vmem:[%s527_s20] sm:$0xff]   ;;  %s3911_s22 = smov (!%p536_p8, %s2633_s22), 31  ;;  %v3221_v3 = vld [vmem:[%s527_s20 + $0x8] sm:$0xff]   ;;  %v3230_v5 = vld [vmem:[%s527_s20 + $0x10] sm:$0xff]   ;;  %v1001_v41 = vshrl.u32 %v966_v32, 16  ;;  %v3317_v51 = vrot.slane %v977_v38, 4  ;;  %v3329_v58 = vor.u32 %v978_v47, %v977_v38  ;;  %s3764_s15 = scalar_lea.vmem %s3872_s11, %s3210_s17 }
  0x16   : > { %2850 = vmatmul.mubr.msk.bf16.vlgmr.msra.gmra.mrb[0].mxu0 %vm630_vm1, %v3216_v2  ;;  %s539_s28 = sadd.s32 %s2630_s14, %s3911_s22  ;;  %v3235_v6 = vld [vmem:[%s527_s20 + $0x18] sm:$0xff]   ;;  %v985_v39 = vrot.slane %v983_v29, 7  ;;  %v1004_v54 = vshll.u32 %v966_v32, 16  ;;  %v3335_v63 = vsel %vm960_vm7, 65537, %v3100_v7  ;;  %vm962_vm10 = vmpackc.low %vm3281_vm11, %vm3281_vm11  ;;  %s3102_s22 = smov 8  }
  0x17   : > { %2853 = vmatprep.mubr.msk.bf16.mxu0 %vm3099_vm0, %v3098_v1  ;;  %s2635_s29 = sshll.u32 %s539_s28, 2  ;;  %2900 = vmatpush3.bf16.msra.mxu0 %v1594_v9  ;;  %v3319_v53 = vrot.slane %v1001_v41, 7  ;;  %v1019_v19 = vshrl.u32 %v3335_v63, 16 }
  0x18   : > { %s541_s18 = scalar_lea.vmem %s3862_s1, %s2635_s29  ;;  %2997 = vmatprep.subr.msk.bf16.mxu0 %vm1295_vm3, %v3254_v12  ;;  %v988_v52 = vor.u32 %v986_v40, %v985_v39  ;;  %v990_v8 = vrot.slane %v985_v39, 4 }
  0x19   : > { %v3054_v4 = vld [vmem:[%s541_s18] sm:$0xff]   ;;  %s903_s13 = scalar_select %p894_p9, 1, 0  ;;  %v1006_v9 = vor.u32 %v1004_v54, %v3319_v53  ;;  %v1008_v40 = vrot.slane %v3319_v53, 4  ;;  %v3367_v41 = vrot.slane %v1019_v19, 7 }
  0x1a   : > { %2866 = vmatmul.mubr.msk.bf16.vlgmr.msra.gmra.mrb[0].mxu1 %vm630_vm1, %v3054_v4  ;;  %s2638_s18 = sshll.u32 %s3207_s16, 1 }
  0x1b   : > { %2870 = vmatpush3.bf16.msra.mxu1 %v1297_v11  ;;  %v904_v22 = vstv %s903_s13  ;;  %v1026_v53 = vrot.slane %v3367_v41, 4  ;;  %s555_s19 = scalar_lea.vmem %s3863_s2, %s2638_s18 }
  0x1c   : > { %2994 = vmatprep.subr.msk.bf16.mxu1 %vm1295_vm3, %v3261_v13  ;;  %vm905_vm9 = vcmp.eq.s32.totalorder %v904_v22, 1 }
  0x1d   : > { %vm3286_vm12 = vmxor %vm905_vm9, %vm3101_vm5  ;;  %vm1045_vm9 = vcmp.ne.s16.totalorder %v3329_v58, 0 }
  0x1e   : > { %2854 = vmatmul.mubr.msk.bf16.gmra.mrb[4].mxu0 %vm630_vm1, %v3221_v3  ;;  %vm929_vm13 = vmand %vm3281_vm11, %vm3286_vm12 }
  0x1f   : > { %2857 = vmatprep.mubr.msk.bf16.mxu0 %vm3099_vm0, %v3098_v1  ;;  %vm3299_vm14 = vmpackc.low %vm3286_vm12, %vm3286_vm12 }
  0x20   : > { %vm1121_vm5 = vmpackc.low %vm929_vm13, %vm929_vm13  ;;  %v1128_v50 = vsel %vm3299_vm14, 65537, %v3100_v7 }
  0x21   : > { %v1129_v59 = vsel %vm1121_vm5, 65537, %v3100_v7  ;;  %v1184_v60 = vshrl.u32 %v1128_v50, 16  ;;  %v1187_v22 = vshll.u32 %v1128_v50, 16 }
  0x22   : > { %v1193_v17 = vshrl.u32 %v1129_v59, 16 }
  0x23   : > { %v1186_v20 = vrot.slane %v1184_v60, 7 }
  0x25   : > { %v1191_v60 = vrot.slane %v1186_v20, 4 }
  0x26   : > { %2858 = vmatmul.mubr.msk.bf16.gmra.mrb[8].mxu0 %vm630_vm1, %v3230_v5 }
  0x27   : > { %2861 = vmatprep.mubr.msk.bf16.mxu0 %vm3099_vm0, %v3098_v1  ;;  %vm971_vm0 = vsmask.f32 256 }
  0x28   : > { %vm3325_vm8 = vmor %vm971_vm0, %vm972_vm4  ;;  %vm1245_vm0 = vsmask.f32 7424 }
  0x29   : > { %v989_v4 = vsel %vm3325_vm8, %v3317_v51, %v988_v52  ;;  %v3354_v31 = vsel %vm3325_vm8, %v990_v8, %v3329_v58  ;;  %v1007_v32 = vsel %vm3325_vm8, %v3317_v51, %v1006_v9  ;;  %v1022_v52 = vshll.u32 %v3335_v63, 16 }
  0x2a   : > { %vm3359_vm12 = vcmp.ne.s16.totalorder %v989_v4, 0  ;;  %vm1047_vm11 = vcmp.ne.s16.totalorder %v3354_v31, 0  ;;  %vm3386_vm13 = vcmp.ne.s16.totalorder %v1007_v32, 0  ;;  %v3394_v4 = vsel %vm3325_vm8, %v1008_v40, %v3329_v58 }
  0x2b   : > { %vm1049_vm4 = vcmp.ne.s16.totalorder %v3394_v4, 0 }
  0x2e   : > { %2862 = vmatmul.mubr.msk.bf16.gmra.mrb[12].mxu0 %vm630_vm1, %v3235_v6 }
  0xe9   : > { %v680_v34 = vpop.f32.mrb[0].mxu0 }
  0xea   : > { %v681_v35 = vadd.f32 %v3279_v27, %v680_v34  ;;  %v2851_v36 = vpop.f32.mrb[1].mxu0  ;;  %v1196_v34 = vshll.u32 %v1129_v59, 16 }
  0xeb   : > { %v683_v37 = vpop.f32.mrb[2].mxu0 }
  0xec   : > { %v719_v43 = vmax.f32 %v681_v35, 0.0  ;;  %v684_v44 = vadd.f32 %v3279_v27, %v683_v37  ;;  %v2852_v45 = vpop.f32.mrb[3].mxu0  ;;  %v1195_v37 = vrot.slane %v1193_v17, 7 }
  0xed   : > { %v712_v1 = vpop.f32.mrb[0].mxu1 }
  0xee   : > { %v2754_v48 = vpack.c.bf16 %v719_v43, %v719_v43  ;;  %v720_v49 = vmax.f32 %v684_v44, 0.0  ;;  %v713_v15 = vadd.f32 %v3279_v27, %v712_v1  ;;  %v2867_v16 = vpop.f32.mrb[1].mxu1  ;;  %v3370_v43 = vsel %vm962_vm10, 65537, %v3100_v7 }
  0xef   : > { %v715_v18 = vpop.f32.mrb[2].mxu1  ;;  %v1189_v44 = vor.u32 %v1187_v22, %v1186_v20  ;;  %v1200_v54 = vrot.slane %v1195_v37, 4  ;;  %vm1282_vm10 = vcmask 31744  }
  0xf0   : > { %770 = vst.msk [vmem:[#allocation2] sm:$0xf] %vm769_vm2, %v2754_v48  ;;  %v2755_v55 = vpack.c.bf16 %v720_v49, %v720_v49  ;;  %v727_v25 = vmax.f32 %v713_v15, 0.0  ;;  %v716_v26 = vadd.f32 %v3279_v27, %v715_v18  ;;  %v2868_v28 = vpop.f32.mrb[3].mxu1  ;;  %v1034_v15 = vsel %vm3325_vm8, %v1026_v53, %v3329_v58 }
  0xf1   : > { %v688_v57 = vpop.f32.mrb[4].mxu0  ;;  %v1190_v8 = vsel %vm3325_vm8, %v1026_v53, %v1189_v44  ;;  %vm3403_vm15 = vcmp.ne.s16.totalorder %v1200_v54, 0  ;;  %v1040_v44 = vshll.u32 %v3370_v43, 16 }
  0xf2   : > { %771 = vst.msk [vmem:[#allocation2 + $0x4] sm:$0xf] %vm769_vm2, %v2755_v55  ;;  %v689_v61 = vadd.f32 %v3279_v27, %v688_v57  ;;  %v2855_v62 = vpop.f32.mrb[5].mxu0  ;;  %v2762_v35 = vpack.c.bf16 %v727_v25, %v727_v25  ;;  %v728_v36 = vmax.f32 %v716_v26, 0.0  ;;  %vm1207_vm5 = vcmp.ne.s16.totalorder %v1190_v8, 0 }
  0xf3   : > { %v691_v0 = vpop.f32.mrb[6].mxu0 }
  0xf4   : > { %v721_v10 = vmax.f32 %v689_v61, 0.0  ;;  %v692_v11 = vadd.f32 %v3279_v27, %v691_v0  ;;  %v2856_v14 = vpop.f32.mrb[7].mxu0  ;;  %778 = vst.msk [vmem:[#allocation2 + $0x20] sm:$0xf] %vm769_vm2, %v2762_v35  ;;  %v2763_v47 = vpack.c.bf16 %v728_v36, %v728_v36  ;;  %v1198_v61 = vor.u32 %v1196_v34, %v1195_v37 }
  0xf5   : > { %v1037_v0 = vshrl.u32 %v3370_v43, 16  ;;  %v1097_v14 = vld [vmem:[#allocation2 + $0x28] sm:$0x1] }
  0xf6   : > { %v2756_v23 = vpack.c.bf16 %v721_v10, %v721_v10  ;;  %v722_v24 = vmax.f32 %v692_v11, 0.0  ;;  %779 = vst.msk [vmem:[#allocation2 + $0x24] sm:$0xf] %vm769_vm2, %v2763_v47  ;;  %v1024_v11 = vor.u32 %v1022_v52, %v3367_v41  ;;  %v1199_v17 = vsel %vm3325_vm8, %v1191_v60, %v1198_v61 }
  0xf7   : > { %v3349_v29 = vld [vmem:[#allocation2] sm:$0xf]  ;;  %v1039_v20 = vrot.slane %v1037_v0, 7  ;;  %v1218_v28 = vsel %vm3403_vm15, %v1097_v14, 0  ;;  %vm1208_vm7 = vcmp.ne.s16.totalorder %v1199_v17, 0 }
  0xf8   : > { %772 = vst.msk [vmem:[#allocation2 + $0x8] sm:$0xf] %vm769_vm2, %v2756_v23  ;;  %v2757_v30 = vpack.c.bf16 %v722_v24, %v722_v24  ;;  %v1054_v48 = vsel %vm1045_vm9, %v3349_v29, 0  ;;  %v1025_v35 = vsel %vm3325_vm8, %v3317_v51, %v1024_v11 }
  0xf9   : > { %v696_v38 = vpop.f32.mrb[8].mxu0  ;;  %v3364_v39 = vld [vmem:[#allocation2 + $0x4] sm:$0xf]  ;;  %vm3437_vm15 = vcmp.ne.s16.totalorder %v1025_v35, 0  ;;  %v1042_v60 = vor.u32 %v1040_v44, %v1039_v20  ;;  %v2701_v35 = vld [vmem:[%s3868_s7 + $0x8] sm:$0x3] }
  0xfa   : > { %773 = vst.msk [vmem:[#allocation2 + $0xc] sm:$0xf] %vm769_vm2, %v2757_v30  ;;  %v697_v45 = vadd.f32 %v3279_v27, %v696_v38  ;;  %v2859_v46 = vpop.f32.mrb[9].mxu0  ;;  %v1055_v49 = vsel %vm3359_vm12, %v3364_v39, 0 }
  0xfb   : > { %v699_v50 = vpop.f32.mrb[10].mxu0  ;;  %v2668_v7 = vcombine.low %v1054_v48, %v1055_v49  ;;  %v3421_v26 = vld [vmem:[#allocation2 + $0x20] sm:$0xf]  ;;  %v2715_v49 = vcombine.low %v1218_v28, %v1218_v28 }
  0xfc   : > { %v723_v55 = vmax.f32 %v697_v45, 0.0  ;;  %v700_v57 = vadd.f32 %v3279_v27, %v699_v50  ;;  %v2860_v59 = vpop.f32.mrb[11].mxu0  ;;  %v1044_v45 = vrot.slane %v1039_v20, 4  ;;  %v1216_v48 = vsel %vm1207_vm5, %v3421_v26, 0 }
  0xfd   : > { %v1249_v10 = vshll.u32 %v2668_v7, 16  ;;  %v3428_v36 = vld [vmem:[#allocation2 + $0x24] sm:$0xf]  ;;  %v1247_v46 = vshrl.u32 %v2668_v7, 16  ;;  %v1896_v8 = vshll.u32 %v2715_v49, 16 }
  0xfe   : > { %v2758_v63 = vpack.c.bf16 %v723_v55, %v723_v55  ;;  %v724_v1 = vmax.f32 %v700_v57, 0.0  ;;  %v1217_v54 = vsel %vm1208_vm7, %v3428_v36, 0  ;;  %vm1053_vm5 = vcmp.ne.s16.totalorder %v1044_v45, 0 }
  0xff   : > { %v3400_v9 = vld [vmem:[#allocation2 + $0x8] sm:$0xf]  ;;  %v1251_v30 = vrot.slane %v1249_v10, 1  ;;  %v2714_v43 = vcombine.low %v1216_v48, %v1217_v54  ;;  %v1096_v21 = vsel %vm3299_vm14, %v3428_v36, 0  ;;  %v1491_v36 = vld [vmem:[%s3870_s9] sm:$0xf] }
 0x100   : > { %774 = vst.msk [vmem:[#allocation2 + $0x10] sm:$0xf] %vm769_vm2, %v2758_v63  ;;  %v2759_v16 = vpack.c.bf16 %v724_v1, %v724_v1  ;;  %v1056_v24 = vsel %vm1047_vm11, %v3400_v9, 0  ;;  %v938_v63 = vld [vmem:[#allocation2 + $0x20] sm:$0x1] }
 0x101   : > { %v704_v18 = vpop.f32.mrb[12].mxu0  ;;  %v3410_v19 = vld [vmem:[#allocation2 + $0xc] sm:$0xf]  ;;  %v1252_v55 = vor.u32 %v1251_v30, %v1247_v46  ;;  %v1888_v1 = vshll.u32 %v2714_v43, 16  ;;  %v1062_v17 = vsel %vm1053_vm5, %v938_v63, 0  ;;  %v1892_v20 = vshrl.u32 %v2714_v43, 16 }
 0x102   : > { %775 = vst.msk [vmem:[#allocation2 + $0x14] sm:$0xf] %vm769_vm2, %v2759_v16  ;;  %v705_v22 = vadd.f32 %v3279_v27, %v704_v18  ;;  %v2863_v23 = vpop.f32.mrb[13].mxu0  ;;  %v1057_v25 = vsel %vm3386_vm13, %v3410_v19, 0  ;;  %v1043_v16 = vsel %vm3325_vm8, %v3317_v51, %v1042_v60  ;;  %v2672_v53 = vcombine.low %v1062_v17, %v1062_v17 }
 0x103   : > { %v707_v32 = vpop.f32.mrb[14].mxu0  ;;  %v2669_v34 = vcombine.low %v1056_v24, %v1057_v25  ;;  %v3462_v18 = vrot.slane %v1888_v1, 1  ;;  %v1898_v24 = vrot.slane %v1896_v8, 1  ;;  %vm1052_vm7 = vcmp.ne.s16.totalorder %v1043_v16, 0 }
 0x104   : > { %v725_v37 = vmax.f32 %v705_v22, 0.0  ;;  %v708_v38 = vadd.f32 %v3279_v27, %v707_v32  ;;  %v2864_v40 = vpop.f32.mrb[15].mxu0  ;;  %v1397_v51 = vsel %vm1295_vm3, %v3261_v13, 0  ;;  %v1764_v43 = vsel %vm1295_vm3, %v2701_v35, 0 }
 0x105   : > { %v1254_v47 = vshll.u32 %v2669_v34, 16  ;;  %v1258_v22 = vshrl.u32 %v2669_v34, 16  ;;  %v1894_v25 = vor.u32 %v1892_v20, %v3462_v18  ;;  %v1278_v40 = vshll.u32 %v2672_v53, 16 }
 0x106   : > { %v2760_v50 = vpack.c.bf16 %v725_v37, %v725_v37  ;;  %v726_v52 = vmax.f32 %v708_v38, 0.0  ;;  %v1211_v1 = vsel %vm3359_vm12, %v3410_v19, 0  ;;  %v1210_v8 = vsel %vm1045_vm9, %v3400_v9, 0 }
 0x107   : > { %v1256_v57 = vrot.slane %v1254_v47, 1  ;;  %v3435_v59 = vld [vmem:[#allocation2 + $0x10] sm:$0xf]  ;;  %v3478_v37 = vsel %vm1245_vm0, %v1894_v25, %v1898_v24  ;;  %v1280_v49 = vrot.slane %v1278_v40, 1 }
 0x108   : > { %776 = vst.msk [vmem:[#allocation2 + $0x18] sm:$0xf] %vm769_vm2, %v2760_v50  ;;  %v2761_v7 = vpack.c.bf16 %v726_v52, %v726_v52  ;;  %v1058_v10 = vsel %vm1049_vm4, %v3435_v59, 0  ;;  %v1091_v58 = vsel %vm3268_vm6, %v3435_v59, 0 }
 0x109   : > { %v1257_v61 = vsel %vm1245_vm0, %v1252_v55, %v1256_v57  ;;  %v3443_v0 = vld [vmem:[#allocation2 + $0x14] sm:$0xf]  ;;  %v1260_v28 = vor.u32 %v1258_v22, %v1256_v57  ;;  %v2677_v55 = vcombine.low %v3349_v29, %v3364_v39  ;;  %v2678_v57 = vcombine.low %v3400_v9, %v3410_v19  ;;  %v2710_v29 = vld [vmem:[%s3868_s7 + $0xa] sm:$0x3] }
 0x10a   : > { %777 = vst.msk [vmem:[#allocation2 + $0x1c] sm:$0xf] %vm769_vm2, %v2761_v7  ;;  %2871 = vmatprep.mubr.msk.bf16.mxu1 %vm1282_vm10, %v1257_v61  ;;  %2901 = vmatprep.mubr.msk.bf16.mxu0 %vm1282_vm10, %v1257_v61  ;;  %v1059_v11 = vsel %vm3437_vm15, %v3443_v0, 0  ;;  %vm1051_vm2 = vcmp.ne.s16.totalorder %v1034_v15, 0  ;;  %v2679_v7 = vcombine.low %v3435_v59, %v3443_v0  ;;  %v1090_v39 = vsel %vm3268_vm6, %v3410_v19, 0 }
 0x10b   : > { %v2670_v14 = vcombine.low %v1058_v10, %v1059_v11  ;;  %v1089_v61 = vsel %vm3268_vm6, %v3400_v9, 0  ;;  %v1213_v10 = vsel %vm3386_vm13, %v3443_v0, 0  ;;  %v2711_v11 = vcombine.low %v1210_v8, %v1211_v1 }
 0x10c   : > { %v2702_v63 = vcombine.low %v1089_v61, %v1090_v39  ;;  %v1092_v33 = vsel %vm3268_vm6, %v3443_v0, 0  ;;  %v1212_v19 = vsel %vm1047_vm11, %v3435_v59, 0  ;;  %v1913_v0 = vsel %vm1295_vm3, %v2710_v29, 0 }
 0x10d   : > { %v1262_v23 = vshll.u32 %v2670_v14, 16  ;;  %v1266_v44 = vshrl.u32 %v2670_v14, 16  ;;  %v2712_v15 = vcombine.low %v1212_v19, %v1213_v10  ;;  %v2703_v9 = vcombine.low %v1091_v58, %v1092_v33 }
 0x10e   : > { %v1867_v16 = vshll.u32 %v2711_v11, 16  ;;  %v1865_v24 = vshrl.u32 %v2711_v11, 16 }
 0x10f   : > { %v1264_v32 = vrot.slane %v1262_v23, 1  ;;  %v3465_v41 = vld [vmem:[#allocation2 + $0x18] sm:$0xf]  ;;  %v1872_v59 = vshll.u32 %v2712_v15, 16  ;;  %v1095_v23 = vsel %vm3299_vm14, %v3421_v26, 0 }
 0x110   : > { %v1060_v12 = vsel %vm1051_vm2, %v3465_v41, 0  ;;  %v1093_v31 = vsel %vm3268_vm6, %v3465_v41, 0  ;;  %v1214_v20 = vsel %vm1049_vm4, %v3465_v41, 0  ;;  %v1869_v27 = vrot.slane %v1867_v16, 1 }
 0x111   : > { %v1265_v30 = vsel %vm1245_vm0, %v1260_v28, %v1264_v32  ;;  %v3472_v34 = vld [vmem:[#allocation2 + $0x1c] sm:$0xf]  ;;  %v1268_v46 = vor.u32 %v1266_v44, %v1264_v32  ;;  %v1874_v25 = vrot.slane %v1872_v59, 1  ;;  %v2705_v28 = vcombine.low %v1095_v23, %v1096_v21 }
 0x112   : > { %2872 = vmatmul.mubr.msk.bf16.vlgmr.msra.gmra.mrb[4].mxu1 %vm1282_vm10, %v1265_v30  ;;  %2902 = vmatmul.mubr.msk.bf16.vlgmr.msra.gmra.mrb[16].mxu0 %vm1282_vm10, %v1265_v30  ;;  %v1061_v38 = vsel %vm1052_vm7, %v3472_v34, 0  ;;  %v2680_v60 = vcombine.low %v3465_v41, %v3472_v34  ;;  %v1094_v14 = vsel %vm3268_vm6, %v3472_v34, 0  ;;  %v1215_v62 = vsel %vm3437_vm15, %v3472_v34, 0 }
 0x113   : > { %2910 = vmatpush3.bf16.msra.mxu0 %v1662_v56  ;;  %v2671_v13 = vcombine.low %v1060_v12, %v1061_v38  ;;  %2880 = vmatpush3.bf16.msra.mxu1 %v1397_v51  ;;  %v2704_v17 = vcombine.low %v1093_v31, %v1094_v14  ;;  %v2713_v22 = vcombine.low %v1214_v20, %v1215_v62  ;;  %v1876_v51 = vshrl.u32 %v2712_v15, 16  ;;  %v2685_v12 = vld [vmem:[%s3869_s8] ss:$0 sm:$0xff] }
 0x114   : > { %2998 = vmatprep.subr.msk.bf16.mxu0 %vm1295_vm3, %v2701_v35  ;;  %v1870_v32 = vor.u32 %v1869_v27, %v1865_v24  ;;  %vm1499_vm6 = vcmask 64512  }
 0x115   : > { %v1270_v45 = vshll.u32 %v2671_v13, 16  ;;  %v1274_v48 = vshrl.u32 %v2671_v13, 16  ;;  %v1880_v4 = vshll.u32 %v2713_v22, 16  ;;  %v1884_v56 = vshrl.u32 %v2713_v22, 16 }
 0x116   : > { %v1875_v41 = vsel %vm1245_vm0, %v1870_v32, %v1874_v25  ;;  %v1878_v26 = vor.u32 %v1876_v51, %v1874_v25 }
 0x117   : > { %v1272_v47 = vrot.slane %v1270_v45, 1  ;;  %v1882_v53 = vrot.slane %v1880_v4, 1 }
 0x119   : > { %v1273_v50 = vsel %vm1245_vm0, %v1268_v46, %v1272_v47  ;;  %v1276_v52 = vor.u32 %v1274_v48, %v1272_v47  ;;  %v1886_v30 = vor.u32 %v1884_v56, %v1882_v53  ;;  %v1883_v34 = vsel %vm1245_vm0, %v1878_v26, %v1882_v53 }
 0x11a   : > { %2875 = vmatprep.mubr.msk.bf16.mxu1 %vm1282_vm10, %v1273_v50  ;;  %2905 = vmatprep.mubr.msk.bf16.mxu0 %vm1282_vm10, %v1273_v50 }
 0x11b   : > { %v1281_v54 = vsel %vm1245_vm0, %v1276_v52, %v1280_v49  ;;  %v1891_v42 = vsel %vm1245_vm0, %v1886_v30, %v3462_v18 }
 0x11c   : > { %2876 = vmatmul.mubr.msk.bf16.gmra.mrb[8].mxu1 %vm1282_vm10, %v1281_v54  ;;  %2906 = vmatmul.mubr.msk.bf16.gmra.mrb[20].mxu0 %vm1282_vm10, %v1281_v54 }
 0x11d   : > { %2881 = vmatprep.mubr.msk.bf16.mxu1 %vm1282_vm10, %v2677_v55  ;;  %2911 = vmatprep.mubr.msk.bf16.mxu0 %vm1282_vm10, %v2677_v55 }
 0x124   : > { %2882 = vmatmul.mubr.msk.bf16.vlgmr.msra.gmra.mrb[4].mxu1 %vm1282_vm10, %v2678_v57  ;;  %2912 = vmatmul.mubr.msk.bf16.vlgmr.msra.gmra.mrb[16].mxu0 %vm1282_vm10, %v2678_v57 }
 0x125   : > { %2920 = vmatpush3.bf16.msra.mxu0 %v1764_v43  ;;  %2885 = vmatprep.mubr.msk.bf16.mxu1 %vm1282_vm10, %v2679_v7 }
 0x126   : > { %2915 = vmatprep.mubr.msk.bf16.mxu0 %vm1282_vm10, %v2679_v7  ;;  %2999 = vmatprep.subr.msk.bf16.mxu0 %vm1295_vm3, %v2710_v29  ;;  %vm1512_vm3 = vcmask 1043456   ;;  %v3057_v7 = vld [vmem:[%s3864_s3] sm:$0xff]  }
 0x127   : > { %2995 = vmatprep.subr.msk.bf16.mxu1 %vm1512_vm3, %v1491_v36  ;;  %v1514_v35 = vsel %vm1512_vm3, %v1491_v36, 0 }
 0x128   : > { %2890 = vmatpush3.bf16.msra.mxu1 %v1514_v35 }
 0x129   : > { %3000 = vmatprep.subr.msk.bf16.mxu1 %vm1512_vm3, %v1491_v36 }
 0x12c   : > { %2886 = vmatmul.mubr.msk.bf16.gmra.mrb[8].mxu1 %vm1282_vm10, %v2680_v60  ;;  %2916 = vmatmul.mubr.msk.bf16.gmra.mrb[20].mxu0 %vm1282_vm10, %v2680_v60 }
 0x12d   : > { %2921 = vmatprep.mubr.msk.bf16.mxu0 %vm1282_vm10, %v2702_v63 }
 0x134   : > { %2922 = vmatmul.mubr.msk.bf16.vlgmr.msra.gmra.mrb[16].mxu0 %vm1282_vm10, %v2703_v9 }
 0x135   : > { %2930 = vmatpush3.bf16.msra.mxu0 %v1913_v0  ;;  %2925 = vmatprep.mubr.msk.bf16.mxu0 %vm1282_vm10, %v2704_v17 }
 0x13c   : > { %2926 = vmatmul.mubr.msk.bf16.gmra.mrb[20].mxu0 %vm1282_vm10, %v2705_v28 }
 0x13d   : > { %2931 = vmatprep.mubr.msk.bf16.mxu0 %vm1282_vm10, %v1875_v41 }
 0x144   : > { %2932 = vmatmul.mubr.msk.bf16.vlgmr.msra.gmra.mrb[16].mxu0 %vm1282_vm10, %v1883_v34 }
 0x145   : > { %2935 = vmatprep.mubr.msk.bf16.mxu0 %vm1282_vm10, %v1891_v42 }
 0x14c   : > { %2936 = vmatmul.mubr.msk.bf16.gmra.mrb[20].mxu0 %vm1282_vm10, %v3478_v37 }
 0x1f7   : > { %v2883_v38 = vpop.f32.mrb[4].mxu1 }
 0x1f8   : > { %v1473_v18 = vadd.f32 %v2883_v38, %v2685_v12  ;;  %v1433_v13 = vpop.f32.mrb[5].mxu1 }
 0x1f9   : > { %v1471_v40 = vadd.f32 %v2685_v12, %v1433_v13  ;;  %v2884_v44 = vpop.f32.mrb[6].mxu1 }
 0x1fa   : > { %v1474_v45 = vadd.f32 %v2884_v44, %v2685_v12  ;;  %v1436_v37 = vpop.f32.mrb[7].mxu1  ;;  %v1481_v47 = vmax.f32 %v1473_v18, 0.0 }
 0x1fb   : > { %v1472_v46 = vadd.f32 %v2685_v12, %v1436_v37  ;;  %v1479_v49 = vmax.f32 %v1471_v40, 0.0  ;;  %v3001_v37 = vld [vmem:[%s555_s19 + $0x4] sm:$0xff]  }
 0x1fc   : > { %v1482_v48 = vmax.f32 %v1474_v45, 0.0 }
 0x1fd   : > { %v1480_v50 = vmax.f32 %v1472_v46, 0.0 }
 0x1fe   : > { %v1488_v52 = vpack.c.bf16 %v1482_v48, %v1481_v47  ;;  %v2781_v47 = vld [vmem:[%s555_s19] ss:$12 sps:$4 sm:$0xff]  }
 0x1ff   : > { %v1487_v54 = vpack.c.bf16 %v1480_v50, %v1479_v49  ;;  %v2887_v55 = vpop.f32.mrb[8].mxu1  ;;  %v2786_v50 = vunpack.c.0.s8 %v3001_v37 }
 0x200   : > { %v1477_v57 = vadd.f32 %v2887_v55, %v2685_v12  ;;  %v1449_v43 = vpop.f32.mrb[9].mxu1  ;;  %v3632_v55 = vld [vmem:[%s3865_s4] ss:$0 sm:$0xff] }
 0x201   : > { %v1475_v29 = vadd.f32 %v2685_v12, %v1449_v43  ;;  %v2888_v39 = vpop.f32.mrb[10].mxu1  ;;  %2891 = vmatprep.mubr.msk.bf16.mxu1 %vm1499_vm6, %v1487_v54  ;;  %v2782_v54 = vunpack.c.0.s8 %v2781_v47  ;;  %vm2207_vm14 = vcmp.eq.s32.totalorder %v2786_v50, 1  ;;  %vm2263_vm12 = vcmp.eq.s32.totalorder %v2786_v50, 2 }
 0x202   : > { %v1478_v60 = vadd.f32 %v2888_v39, %v2685_v12  ;;  %v1452_v61 = vpop.f32.mrb[11].mxu1  ;;  %2892 = vmatmul.mubr.msk.bf16.vlgmr.msra.gmra.mrb[12].mxu1 %vm1499_vm6, %v1488_v52  ;;  %v1485_v1 = vmax.f32 %v1477_v57, 0.0  ;;  %v2787_v52 = vunpack.c.1.s8 %v3001_v37  ;;  %v3634_v57 = vunpack.c.1.s8 %v2781_v47 }
 0x203   : > { %v1476_v63 = vadd.f32 %v2685_v12, %v1452_v61  ;;  %2940 = vmatpush3.bf16.msra.mxu1 %v1514_v35  ;;  %v1483_v10 = vmax.f32 %v1475_v29, 0.0  ;;  %vm2205_vm9 = vcmp.eq.s32.totalorder %v2782_v54, 1  ;;  %vm2191_vm11 = vcmp.eq.s32.totalorder %v2786_v50, 0 }
 0x204   : > { %v1486_v8 = vmax.f32 %v1478_v60, 0.0  ;;  %2949 = vmatprep.subr.bf16.mxu1 %v3057_v7  ;;  %vm2208_vm8 = vcmp.eq.s32.totalorder %v2787_v52, 1  ;;  %vm2192_vm13 = vcmp.eq.s32.totalorder %v2787_v52, 0  ;;  %vm2189_vm0 = vcmp.eq.s32.totalorder %v2782_v54, 0 }
 0x205   : > { %v1484_v11 = vmax.f32 %v1476_v63, 0.0  ;;  %vm2264_vm4 = vcmp.eq.s32.totalorder %v2787_v52, 2  ;;  %vm2261_vm10 = vcmp.eq.s32.totalorder %v2782_v54, 2  ;;  %vm2262_vm15 = vcmp.eq.s32.totalorder %v3634_v57, 2 }
 0x206   : > { %v1490_v33 = vpack.c.bf16 %v1486_v8, %v1485_v1  ;;  %vm2190_vm5 = vcmp.eq.s32.totalorder %v3634_v57, 0  ;;  %vm2280_vm2 = vcmp.eq.s32.totalorder %v2787_v52, 3  ;;  %vm2277_vm7 = vcmp.eq.s32.totalorder %v2782_v54, 3 }
 0x207   : > { %v1489_v19 = vpack.c.bf16 %v1484_v11, %v1483_v10  ;;  %vm2278_vm3 = vcmp.eq.s32.totalorder %v3634_v57, 3 }
 0x209   : > { %2895 = vmatprep.mubr.msk.bf16.mxu1 %vm1499_vm6, %v1489_v19 }
 0x20a   : > { %2896 = vmatmul.mubr.msk.bf16.gmra.mrb[16].mxu1 %vm1499_vm6, %v1490_v33  ;;  %v3647_v33 = vunpack.c.2.s8 %v2781_v47 }
 0x217   : > { %v2933_v14 = vpop.f32.mrb[16].mxu0 }
 0x218   : > { %v1990_v15 = vadd.f32 %v2933_v14, %v2685_v12  ;;  %v1949_v58 = vpop.f32.mrb[17].mxu0  ;;  %v3653_v14 = vunpack.c.3.s8 %v2781_v47 }
 0x219   : > { %v1988_v62 = vadd.f32 %v2685_v12, %v1949_v58  ;;  %v2934_v9 = vpop.f32.mrb[18].mxu0 }
 0x21a   : > { %v1991_v0 = vadd.f32 %v2934_v9, %v2685_v12  ;;  %v1952_v31 = vpop.f32.mrb[19].mxu0  ;;  %v1998_v17 = vmax.f32 %v1990_v15, 0.0  ;;  %v3655_v15 = vunpack.c.2.s8 %v3001_v37  ;;  %v2791_v9 = vunpack.c.3.s8 %v3001_v37 }
 0x21b   : > { %v1989_v16 = vadd.f32 %v2685_v12, %v1952_v31  ;;  %v1996_v59 = vmax.f32 %v1988_v62, 0.0 }
 0x21c   : > { %v1999_v20 = vmax.f32 %v1991_v0, 0.0 }
 0x21d   : > { %v1997_v22 = vmax.f32 %v1989_v16, 0.0 }
 0x21e   : > { %v2005_v27 = vpack.c.bf16 %v1999_v20, %v1998_v17 }
 0x21f   : > { %v2004_v23 = vpack.c.bf16 %v1997_v22, %v1996_v59  ;;  %v2937_v21 = vpop.f32.mrb[20].mxu0 }
 0x220   : > { %v1994_v24 = vadd.f32 %v2937_v21, %v2685_v12  ;;  %v1965_v25 = vpop.f32.mrb[21].mxu0 }
 0x221   : > { %v1992_v4 = vadd.f32 %v2685_v12, %v1965_v25  ;;  %v2938_v28 = vpop.f32.mrb[22].mxu0  ;;  %2941 = vmatprep.mubr.msk.bf16.mxu1 %vm1499_vm6, %v2004_v23 }
 0x222   : > { %v1995_v32 = vadd.f32 %v2938_v28, %v2685_v12  ;;  %v1968_v41 = vpop.f32.mrb[23].mxu0  ;;  %2942 = vmatmul.mubr.msk.bf16.vlgmr.msra.gmra.mrb[20].mxu1 %vm1499_vm6, %v2005_v27  ;;  %v2002_v56 = vmax.f32 %v1994_v24, 0.0 }
 0x223   : > { %v1993_v53 = vadd.f32 %v2685_v12, %v1968_v41  ;;  %2950 = vmatpush3.bf16.msra.mxu1 %v3057_v7  ;;  %v2000_v30 = vmax.f32 %v1992_v4, 0.0 }
 0x224   : > { %v2003_v51 = vmax.f32 %v1995_v32, 0.0 }
 0x225   : > { %v2001_v26 = vmax.f32 %v1993_v53, 0.0 }
 0x226   : > { %v2007_v34 = vpack.c.bf16 %v2003_v51, %v2002_v56 }
 0x227   : > { %v2006_v42 = vpack.c.bf16 %v2001_v26, %v2000_v30 }
 0x229   : > { %2945 = vmatprep.mubr.msk.bf16.mxu1 %vm1499_vm6, %v2006_v42 }
 0x22a   : > { %2946 = vmatmul.mubr.msk.bf16.gmra.mrb[24].mxu1 %vm1499_vm6, %v2007_v34 }
 0x22b   : > { %2951 = vmatprep.mubr.msk.bf16.mxu1 %vm630_vm1, %v3216_v2 }
 0x232   : > { %2952 = vmatmul.mubr.msk.bf16.vlgmr.msra.gmra.mrb[28].mxu1 %vm630_vm1, %v3221_v3 }
 0x233   : > { %2955 = vmatprep.mubr.msk.bf16.mxu1 %vm630_vm1, %v3230_v5 }
 0x23a   : > { %2956 = vmatmul.mubr.msk.bf16.gmra.mrb[32].mxu1 %vm630_vm1, %v3235_v6  ;;  %vm2279_vm1 = vcmp.eq.s32.totalorder %v2786_v50, 3 }
 0x2d5   : > { %v3593_v36 = vpop.f32.mrb[12].mxu1 }
 0x2d6   : > { %v3595_v35 = vpop.f32.mrb[13].mxu1 }
 0x2d7   : > { %v3597_v12 = vpop.f32.mrb[14].mxu1 }
 0x2d8   : > { %v3599_v38 = vpop.f32.mrb[15].mxu1 }
 0x2dd   : > { %v3601_v18 = vpop.f32.mrb[16].mxu1 }
 0x2de   : > { %v3603_v2 = vpop.f32.mrb[17].mxu1 }
 0x2df   : > { %v3605_v13 = vpop.f32.mrb[18].mxu1 }
 0x2e0   : > { %v3607_v3 = vpop.f32.mrb[19].mxu1 }
 0x2f5   : > { %v3609_v5 = vpop.f32.mrb[20].mxu1 }
 0x2f6   : > { %v3611_v40 = vpop.f32.mrb[21].mxu1 }
 0x2f7   : > { %v3613_v6 = vpop.f32.mrb[22].mxu1 }
 0x2f8   : > { %v3616_v44 = vpop.f32.mrb[23].mxu1 }
 0x2fd   : > { %v3621_v45 = vpop.f32.mrb[24].mxu1 }
 0x2fe   : > { %v3623_v46 = vpop.f32.mrb[25].mxu1 }
 0x2ff   : > { %v3625_v48 = vpop.f32.mrb[26].mxu1 }
 0x300   : > { %v3627_v49 = vpop.f32.mrb[27].mxu1 }
 0x305   : > { %v2953_v43 = vpop.f32.mrb[28].mxu1 }
 0x306   : > { %v2151_v7 = vadd.f32 %v2953_v43, %v3632_v55  ;;  %v2142_v29 = vpop.f32.mrb[29].mxu1 }
 0x307   : > { %v2143_v39 = vadd.f32 %v3632_v55, %v2142_v29  ;;  %v2954_v60 = vpop.f32.mrb[30].mxu1 }
 0x308   : > { %v2154_v61 = vadd.f32 %v2954_v60, %v3632_v55  ;;  %v2145_v63 = vpop.f32.mrb[31].mxu1  ;;  %v2287_v1 = vsel %vm2279_vm1, %v2151_v7, 0.0  ;;  %v2215_v8 = vsel %vm2207_vm14, %v2151_v7, 0.0  ;;  %v3642_v10 = vsel %vm2263_vm12, %v2151_v7, 0.0  ;;  %v3736_v60 = vld [vmem:[%s3871_s10] ss:$0 sm:$0xff] }
 0x309   : > { %v2146_v11 = vadd.f32 %v3632_v55, %v2145_v63  ;;  %2305 = vrot.lane.b32.xlu0 %v2287_v1, %s3102_s22  ;;  %2233 = vrot.lane.b32.xlu1 %v2215_v8, %s3102_s22  ;;  %v3650_v19 = vsel %vm2191_vm11, %v2151_v7, 0.0  ;;  %v3661_v62 = vsel %vm2189_vm0, %v2143_v39, 0.0  ;;  %v3667_v31 = vsel %vm2261_vm10, %v2143_v39, 0.0 }
 0x30a   : > { %v3658_v58 = vsel %vm2192_vm13, %v2154_v61, 0.0  ;;  %v3664_v0 = vsel %vm2264_vm4, %v2154_v61, 0.0  ;;  %v2216_v16 = vsel %vm2208_vm8, %v2154_v61, 0.0  ;;  %v2213_v17 = vsel %vm2205_vm9, %v2143_v39, 0.0 }
 0x30b   : > { %v3673_v20 = vsel %vm2262_vm15, %v2146_v11, 0.0  ;;  %v3675_v59 = vsel %vm2190_vm5, %v2146_v11, 0.0  ;;  %vm2195_vm1 = vcmp.eq.s32.totalorder %v3647_v33, 0  ;;  %vm2206_vm14 = vcmp.eq.s32.totalorder %v3634_v57, 1 }
 0x30c   : > { %vm2196_vm8 = vcmp.eq.s32.totalorder %v3653_v14, 0  ;;  %vm2193_vm9 = vcmp.eq.s32.totalorder %v3655_v15, 0  ;;  %vm2194_vm12 = vcmp.eq.s32.totalorder %v2791_v9, 0  ;;  %vm2266_vm11 = vcmp.eq.s32.totalorder %v2791_v9, 2 }
 0x30d   : > { %2235 = vrot.lane.b32.xlu1 %v2216_v16, %s3102_s22  ;;  %2229 = vrot.lane.b32.xlu0 %v2213_v17, %s3102_s22  ;;  %v2957_v22 = vpop.f32.mrb[32].mxu1  ;;  %vm2265_vm13 = vcmp.eq.s32.totalorder %v3655_v15, 2  ;;  %v2288_v25 = vsel %vm2280_vm2, %v2154_v61, 0.0  ;;  %v2285_v4 = vsel %vm2277_vm7, %v2143_v39, 0.0  ;;  %vm2268_vm0 = vcmp.eq.s32.totalorder %v3653_v14, 2 }
 0x30e   : > { %v2167_v27 = vadd.f32 %v2957_v22, %v3632_v55  ;;  %v2158_v23 = vpop.f32.mrb[33].mxu1  ;;  %vm2267_vm4 = vcmp.eq.s32.totalorder %v3647_v33, 2  ;;  %v2286_v42 = vsel %vm2278_vm3, %v2146_v11, 0.0  ;;  %v2214_v37 = vsel %vm2206_vm14, %v2146_v11, 0.0 }
 0x30f   : > { %v2159_v21 = vadd.f32 %v3632_v55, %v2158_v23  ;;  %v2958_v24 = vpop.f32.mrb[34].mxu1  ;;  %vm2212_vm10 = vcmp.eq.s32.totalorder %v3653_v14, 1  ;;  %vm2211_vm15 = vcmp.eq.s32.totalorder %v3647_v33, 1  ;;  %vm2210_vm5 = vcmp.eq.s32.totalorder %v2791_v9, 1 }
 0x310   : > { %v2170_v28 = vadd.f32 %v2958_v24, %v3632_v55  ;;  %v2161_v32 = vpop.f32.mrb[35].mxu1  ;;  %v3688_v41 = vsel %vm2195_vm1, %v2167_v27, 0.0  ;;  %v3715_v50 = vsel %vm2267_vm4, %v2167_v27, 0.0  ;;  %v2219_v54 = vsel %vm2211_vm15, %v2167_v27, 0.0 }
 0x311   : > { %2307 = vrot.lane.b32.xlu1 %v2288_v25, %s3102_s22  ;;  %2301 = vrot.lane.b32.xlu0 %v2285_v4, %s3102_s22  ;;  %v2162_v53 = vadd.f32 %v3632_v55, %v2161_v32  ;;  %v3693_v56 = vsel %vm2193_vm9, %v2159_v21, 0.0  ;;  %v3701_v30 = vsel %vm2265_vm13, %v2159_v21, 0.0  ;;  %vm2209_vm2 = vcmp.eq.s32.totalorder %v3655_v15, 1 }
 0x312   : > { %v3699_v51 = vsel %vm2196_vm8, %v2170_v28, 0.0  ;;  %v3713_v47 = vsel %vm2268_vm0, %v2170_v28, 0.0  ;;  %v2220_v52 = vsel %vm2212_vm10, %v2170_v28, 0.0  ;;  %v2217_v57 = vsel %vm2209_vm2, %v2159_v21, 0.0 }
 0x313   : > { %v3704_v26 = vsel %vm2194_vm12, %v2162_v53, 0.0  ;;  %v3707_v34 = vsel %vm2266_vm11, %v2162_v53, 0.0  ;;  %v2218_v55 = vsel %vm2210_vm5, %v2162_v53, 0.0  ;;  %vm2282_vm7 = vcmp.eq.s32.totalorder %v2791_v9, 3 }
 0x314   : > { %vm2281_vm3 = vcmp.eq.s32.totalorder %v3655_v15, 3  ;;  %v2290_v43 = vsel %vm2282_vm7, %v2162_v53, 0.0  ;;  %vm2284_vm1 = vcmp.eq.s32.totalorder %v3653_v14, 3  ;;  %vm2283_vm14 = vcmp.eq.s32.totalorder %v3647_v33, 3 }
 0x315   : > { %2303 = vrot.lane.b32.xlu1 %v2286_v42, %s3102_s22  ;;  %2231 = vrot.lane.b32.xlu0 %v2214_v37, %s3102_s22  ;;  %v2289_v7 = vsel %vm2281_vm3, %v2159_v21, 0.0  ;;  %v2292_v29 = vsel %vm2284_vm1, %v2170_v28, 0.0  ;;  %v2291_v39 = vsel %vm2283_vm14, %v2167_v27, 0.0  ;;  %v1559_v61 = vadd.f32 %v3593_v36, %v3736_v60 }
 0x316   : > { %v2063_v63 = vadd.f32 %v3609_v5, %v3736_v60  ;;  %v1551_v1 = vadd.f32 %v3736_v60, %v3595_v35  ;;  %v1562_v11 = vadd.f32 %v3597_v12, %v3736_v60  ;;  %v2055_v35 = vadd.f32 %v3736_v60, %v3611_v40 }
 0x317   : > { %v1583_v8 = vmax.f32 %v1559_v61, 0.0  ;;  %v2066_v12 = vadd.f32 %v3613_v6, %v3736_v60  ;;  %vm2381_vm8 = vcmask 125952   ;;  %v1554_v28 = vadd.f32 %v3736_v60, %v3599_v38 }
 0x318   : > { %v2087_v33 = vmax.f32 %v2063_v63, 0.0  ;;  %v1581_v17 = vmax.f32 %v1551_v1, 0.0  ;;  %v1584_v22 = vmax.f32 %v1562_v11, 0.0  ;;  %v2085_v32 = vmax.f32 %v2055_v35, 0.0 }
 0x319   : > { %2243 = vrot.lane.b32.xlu1 %v2220_v52, %s3102_s22  ;;  %2241 = vrot.lane.b32.xlu0 %v2219_v54, %s3102_s22  ;;  %v2088_v53 = vmax.f32 %v2066_v12, 0.0  ;;  %v2058_v42 = vadd.f32 %v3736_v60, %v3616_v44 }
 0x31b   : > { %v2086_v61 = vmax.f32 %v2058_v42, 0.0 }
 0x31d   : > { %2239 = vrot.lane.b32.xlu1 %v2218_v55, %s3102_s22  ;;  %2237 = vrot.lane.b32.xlu0 %v2217_v57, %s3102_s22 }
 0x321   : > { %2311 = vrot.lane.b32.xlu1 %v2290_v43, %s3102_s22  ;;  %2309 = vrot.lane.b32.xlu0 %v2289_v7, %s3102_s22  ;;  %v1582_v7 = vmax.f32 %v1554_v28, 0.0 }
 0x325   : > { %2315 = vrot.lane.b32.xlu1 %v2292_v29, %s3102_s22  ;;  %2313 = vrot.lane.b32.xlu0 %v2291_v39, %s3102_s22  ;;  %v1575_v29 = vadd.f32 %v3601_v18, %v3736_v60  ;;  %v1578_v39 = vadd.f32 %v3605_v13, %v3736_v60 }
 0x37b   : > { %v2306_v14 = vpop.permute.xlu0 %2305  ;;  %v2234_v15 = vpop.permute.xlu1 %2233 }
 0x37c   : > { %v2327_v9 = vsel %vm1499_vm6, %v3642_v10, %v2306_v14  ;;  %v2255_v36 = vsel %vm1499_vm6, %v3650_v19, %v2234_v15  ;;  %v1567_v15 = vadd.f32 %v3736_v60, %v3603_v2 }
 0x37d   : > { %v2392_v16 = vadd.f32 %v2327_v9, %v2087_v33  ;;  %v2335_v5 = vadd.f32 %v2255_v36, %v1583_v8  ;;  %v1570_v9 = vadd.f32 %v3736_v60, %v3607_v3  ;;  %v1587_v36 = vmax.f32 %v1575_v29, 0.0 }
 0x37f   : > { %v2400_v27 = vmax.f32 %v2392_v16, 0.0  ;;  %v2343_v23 = vmax.f32 %v2335_v5, 0.0  ;;  %v2236_v21 = vpop.permute.xlu1 %2235  ;;  %v2230_v24 = vpop.permute.xlu0 %2229  ;;  %v1588_v16 = vmax.f32 %v1578_v39, 0.0 }
 0x380   : > { %v2256_v40 = vsel %vm1499_vm6, %v3658_v58, %v2236_v21  ;;  %v2253_v6 = vsel %vm1499_vm6, %v3661_v62, %v2230_v24  ;;  %v1586_v21 = vmax.f32 %v1570_v9, 0.0  ;;  %v2071_v24 = vadd.f32 %v3736_v60, %v3623_v46 }
 0x381   : > { %v2774_v10 = vpack.c.bf16 %v2400_v27, %v2400_v27  ;;  %v2766_v19 = vpack.c.bf16 %v2343_v23, %v2343_v23  ;;  %v2336_v25 = vadd.f32 %v2256_v40, %v1584_v22  ;;  %v2333_v4 = vadd.f32 %v2253_v6, %v1581_v17 }
 0x382   : > { %v1585_v23 = vmax.f32 %v1567_v15, 0.0  ;;  %v2074_v40 = vadd.f32 %v3736_v60, %v3627_v49  ;;  %v2089_v42 = vmax.f32 %v2071_v24, 0.0 }
 0x383   : > { %2440 = vst.msk [vmem:[%s3758_s21 + $0x8] sm:$0xf] %vm2381_vm8, %v2774_v10  ;;  %2384 = vst.msk [vmem:[%s3764_s15 + $0x8] sm:$0xf] %vm2381_vm8, %v2766_v19  ;;  %v2344_v58 = vmax.f32 %v2336_v25, 0.0  ;;  %v2341_v62 = vmax.f32 %v2333_v4, 0.0  ;;  %v2308_v37 = vpop.permute.xlu1 %2307  ;;  %v2302_v52 = vpop.permute.xlu0 %2301 }
 0x384   : > { %v2328_v54 = vsel %vm1499_vm6, %v3664_v0, %v2308_v37  ;;  %v2325_v38 = vsel %vm1499_vm6, %v3667_v31, %v2302_v52 }
 0x385   : > { %v2767_v55 = vpack.c.bf16 %v2344_v58, %v2344_v58  ;;  %v2764_v57 = vpack.c.bf16 %v2341_v62, %v2341_v62  ;;  %v2393_v43 = vadd.f32 %v2328_v54, %v2088_v53  ;;  %v2390_v44 = vadd.f32 %v2325_v38, %v2085_v32 }
 0x386   : > { %v2079_v32 = vadd.f32 %v3621_v45, %v3736_v60  ;;  %v2082_v53 = vadd.f32 %v3625_v48, %v3736_v60  ;;  %v2090_v58 = vmax.f32 %v2074_v40, 0.0 }
 0x387   : > { %2385 = vst.msk [vmem:[%s3764_s15 + $0xc] sm:$0xf] %vm2381_vm8, %v2767_v55  ;;  %2382 = vst.msk [vmem:[%s3764_s15] sm:$0xf] %vm2381_vm8, %v2764_v57  ;;  %v2401_v0 = vmax.f32 %v2393_v43, 0.0  ;;  %v2398_v31 = vmax.f32 %v2390_v44, 0.0  ;;  %v2304_v63 = vpop.permute.xlu1 %2303  ;;  %v2232_v1 = vpop.permute.xlu0 %2231 }
 0x388   : > { %v2326_v8 = vsel %vm1499_vm6, %v3673_v20, %v2304_v63  ;;  %v2254_v18 = vsel %vm1499_vm6, %v3675_v59, %v2232_v1  ;;  %v2091_v55 = vmax.f32 %v2079_v32, 0.0  ;;  %v2092_v57 = vmax.f32 %v2082_v53, 0.0 }
 0x389   : > { %v2775_v11 = vpack.c.bf16 %v2401_v0, %v2401_v0  ;;  %v2772_v33 = vpack.c.bf16 %v2398_v31, %v2398_v31  ;;  %v2391_v13 = vadd.f32 %v2326_v8, %v2086_v61  ;;  %v2334_v14 = vadd.f32 %v2254_v18, %v1582_v7 }
 0x38b   : > { %2441 = vst.msk [vmem:[%s3758_s21 + $0xc] sm:$0xf] %vm2381_vm8, %v2775_v11  ;;  %2438 = vst.msk [vmem:[%s3758_s21] sm:$0xf] %vm2381_vm8, %v2772_v33  ;;  %v2399_v20 = vmax.f32 %v2391_v13, 0.0  ;;  %v2342_v59 = vmax.f32 %v2334_v14, 0.0  ;;  %v2244_v5 = vpop.permute.xlu1 %2243  ;;  %v2242_v17 = vpop.permute.xlu0 %2241 }
 0x38c   : > { %v2260_v35 = vsel %vm1499_vm6, %v3699_v51, %v2244_v5  ;;  %v2259_v2 = vsel %vm1499_vm6, %v3688_v41, %v2242_v17 }
 0x38d   : > { %v2773_v22 = vpack.c.bf16 %v2399_v20, %v2399_v20  ;;  %v2765_v3 = vpack.c.bf16 %v2342_v59, %v2342_v59  ;;  %v2340_v12 = vadd.f32 %v2260_v35, %v1588_v16  ;;  %v2339_v27 = vadd.f32 %v2259_v2, %v1587_v36 }
 0x38f   : > { %2439 = vst.msk [vmem:[%s3758_s21 + $0x4] sm:$0xf] %vm2381_vm8, %v2773_v22  ;;  %2383 = vst.msk [vmem:[%s3764_s15 + $0x4] sm:$0xf] %vm2381_vm8, %v2765_v3  ;;  %v2348_v51 = vmax.f32 %v2340_v12, 0.0  ;;  %v2347_v41 = vmax.f32 %v2339_v27, 0.0  ;;  %v2240_v6 = vpop.permute.xlu1 %2239  ;;  %v2238_v10 = vpop.permute.xlu0 %2237 }
 0x390   : > { %v2258_v19 = vsel %vm1499_vm6, %v3704_v26, %v2240_v6  ;;  %v2257_v25 = vsel %vm1499_vm6, %v3693_v56, %v2238_v10 }
 0x391   : > { %v2771_v46 = vpack.c.bf16 %v2348_v51, %v2348_v51  ;;  %v2770_v4 = vpack.c.bf16 %v2347_v41, %v2347_v41  ;;  %v2338_v28 = vadd.f32 %v2258_v19, %v1586_v21  ;;  %v2337_v49 = vadd.f32 %v2257_v25, %v1585_v23 }
 0x393   : > { %2389 = vst.msk [vmem:[%s3764_s15 + $0x1c] sm:$0xf] %vm2381_vm8, %v2771_v46  ;;  %2388 = vst.msk [vmem:[%s3764_s15 + $0x18] sm:$0xf] %vm2381_vm8, %v2770_v4  ;;  %v2346_v26 = vmax.f32 %v2338_v28, 0.0  ;;  %v2345_v56 = vmax.f32 %v2337_v49, 0.0  ;;  %v2312_v62 = vpop.permute.xlu1 %2311  ;;  %v2310_v37 = vpop.permute.xlu0 %2309 }
 0x394   : > { %v2330_v52 = vsel %vm1499_vm6, %v3707_v34, %v2312_v62  ;;  %v2329_v45 = vsel %vm1499_vm6, %v3701_v30, %v2310_v37 }
 0x395   : > { %v2769_v54 = vpack.c.bf16 %v2346_v26, %v2346_v26  ;;  %v2768_v48 = vpack.c.bf16 %v2345_v56, %v2345_v56  ;;  %v2395_v60 = vadd.f32 %v2330_v52, %v2090_v58  ;;  %v2394_v38 = vadd.f32 %v2329_v45, %v2089_v42 }
 0x397   : > { %2387 = vst.msk [vmem:[%s3764_s15 + $0x14] sm:$0xf] %vm2381_vm8, %v2769_v54  ;;  %2386 = vst.msk [vmem:[%s3764_s15 + $0x10] sm:$0xf] %vm2381_vm8, %v2768_v48  ;;  %v2403_v43 = vmax.f32 %v2395_v60, 0.0  ;;  %v2402_v44 = vmax.f32 %v2394_v38, 0.0  ;;  %v2316_v34 = vpop.permute.xlu1 %2315  ;;  %v2314_v7 = vpop.permute.xlu0 %2313 }
 0x398   : > { %v2332_v30 = vsel %vm1499_vm6, %v3713_v47, %v2316_v34  ;;  %v2331_v29 = vsel %vm1499_vm6, %v3715_v50, %v2314_v7 }
 0x399   : > { %v2777_v39 = vpack.c.bf16 %v2403_v43, %v2403_v43  ;;  %v2776_v61 = vpack.c.bf16 %v2402_v44, %v2402_v44  ;;  %v2397_v0 = vadd.f32 %v2332_v30, %v2092_v57  ;;  %v2396_v31 = vadd.f32 %v2331_v29, %v2091_v55 }
 0x39b   : > { %2443 = vst.msk [vmem:[%s3758_s21 + $0x14] sm:$0xf] %vm2381_vm8, %v2777_v39  ;;  %2442 = vst.msk [vmem:[%s3758_s21 + $0x10] sm:$0xf] %vm2381_vm8, %v2776_v61  ;;  %v2405_v63 = vmax.f32 %v2397_v0, 0.0  ;;  %v2404_v1 = vmax.f32 %v2396_v31, 0.0 }
 0x39d   : > { %v2779_v8 = vpack.c.bf16 %v2405_v63, %v2405_v63  ;;  %v2778_v18 = vpack.c.bf16 %v2404_v1, %v2404_v1 }
 0x39f   : > { %2445 = vst.msk [vmem:[%s3758_s21 + $0x1c] sm:$0xf] %vm2381_vm8, %v2779_v8  ;;  %2444 = vst.msk [vmem:[%s3758_s21 + $0x18] sm:$0xf] %vm2381_vm8, %v2778_v18 }
 0x3a0 PF: > { %s23_s25 = sadd.s32 1, %s3096_s25   ;;  %s3894_s21 = smov %s3088_s23 }
 0x3a1   : > { %p20_p10 = scmp.ge.s32.totalorder %s23_s25, 10   ;;  %s3895_s22 = smov %s3092_s24 }
 0x3a2   : > { %s3896_s23 = smov %s3899_s26  ;;  %s3897_s24 = smov %s3903_s27 }
 0x3a3   :  { %22 = sbr.rel (!%p20_p10) target bundleno = 3 (0x3), region = 117 }

</bundles_post_ra>
